<compile_context>
chip_gen: v7x
topology: tpu7x:2x2x1
jax: 0.10.0
libtpu: 0.0.40
codegen_flags: <defaults>
</compile_context>

<pallas_src>
import functools

import jax
import jax.numpy as jnp
from jax import lax
from jax.experimental import pallas as pl
from jax.experimental.pallas import tpu as pltpu


# ----------------------------------------------------------------------------
# Pallas kernel: lane-dense batched congruence via a Kronecker GEMM
#     Y_flat[b, :] = X_flat[b, :] @ W,   W = kron(L.T, R),  X_flat: (B, N*N)
# ----------------------------------------------------------------------------
def _kron_gemm_kernel(w_ref, x_ref, o_ref):
    o_ref[...] = jnp.dot(
        x_ref[...], w_ref[...], preferred_element_type=jnp.float32
    ).astype(o_ref.dtype)


def _pick_batch_tile(B: int, max_tb: int) -> int:
    if B <= 8:
        return B                       # block dim == full array dim (allowed)
    return max(8, min(max_tb, (B // 8) * 8))


def _kron_gemm(W: jax.Array, x_flat: jax.Array, *, max_tb: int = 2048) -> jax.Array:
    B, D = x_flat.shape                # D = N*N (256 for N=16)
    tb = _pick_batch_tile(B, max_tb)
    grid = (pl.cdiv(B, tb),)           # no padding copy: edge block is masked
    return pl.pallas_call(
        _kron_gemm_kernel,
        out_shape=jax.ShapeDtypeStruct((B, D), x_flat.dtype),
        grid_spec=pltpu.PrefetchScalarGridSpec(
            num_scalar_prefetch=0,
            grid=grid,
            in_specs=[
                pl.BlockSpec((D, D), lambda i: (0, 0)),     # W resident in VMEM
                pl.BlockSpec((tb, D), lambda i: (i, 0)),    # X batch tile
            ],
            out_specs=pl.BlockSpec((tb, D), lambda i: (i, 0)),
        ),
        compiler_params=pltpu.CompilerParams(
            dimension_semantics=("parallel",),
            # tb=2048 -> ~9 MB live (in+out double-buffered + W); explicit limit
            # so v5e's 16 MiB scoped default is not a constraint, and well under
            # v7x's 64 MiB physical VMEM.
            vmem_limit_bytes=32 * 1024 * 1024,
        ),
    )(W, x_flat)


def congruence_lr(L: jax.Array, R: jax.Array, x_flat: jax.Array,
                  *, max_tb: int = 2048) -> jax.Array:
    """Batched bilinear transform  Y[b] = L @ X[b] @ R  on row-major-flattened X.

    Only sensible for small N (the Kronecker matrix is N^2 x N^2); for N >~ 32
    a stacked-GEMM formulation would be preferable.
    """
    W = jnp.kron(L.T, R)               # vec_r(L X R) = (L ⊗ R^T) vec_r(X)
    return _kron_gemm(W, x_flat, max_tb=max_tb)


# ----------------------------------------------------------------------------
# Plain-JAX glue (eigendecomposition-based matrix functions).
# TODO(synk): eigh / matrix log / exp / sqrt / inv-sqrt have no Pallas TPU
# equivalent; they stay in jnp.linalg.eigh-based spectral calculus.
# ----------------------------------------------------------------------------
def _spd_fn(mat: jax.Array, fn) -> jax.Array:
    ev, V = jnp.linalg.eigh(mat)
    return (V * fn(ev)) @ V.T


def _sqrtm(mat):       # SqrtmEigFunction
    return _spd_fn(mat, jnp.sqrt)


def _inv_sqrtm(mat):   # InvSqrtmEigFunction
    return _spd_fn(mat, lambda e: 1.0 / jnp.sqrt(e))


def spd_affine_invariant_geodesic(A, B, t):
    A12 = _sqrtm(A)
    Am12 = _inv_sqrtm(A)
    M = Am12 @ B @ Am12
    Mt = _spd_fn(M, lambda e: e ** t)
    return A12 @ Mt @ A12


# ----------------------------------------------------------------------------
# Karcher (Riemannian) mean — fixed max_iter, device-side step-size / early
# exit flag (no host sync inside the loop).
# ----------------------------------------------------------------------------
def riemannian_mean_spd(X_flat, N, *, initial_stepsize=1.0, max_iter=5,
                        tol=1e-6, weights=None):
    B = X_flat.shape[0]
    dtype = X_flat.dtype
    if weights is None:
        weights = jnp.ones((B,), dtype)
    weights = weights / jnp.sum(weights)

    X = X_flat.reshape(B, N, N)
    mean0 = jnp.einsum('bij,b->ij', X, weights)

    def body(_, carry):
        mean, nu, tau, done = carry

        def do_iter(args):
            mean, nu, tau = args
            ev, V = jnp.linalg.eigh(mean)
            s = jnp.sqrt(ev)
            C12 = (V * s) @ V.T
            C12_inv = (V * (1.0 / s)) @ V.T

            # Hot path: inner[b] = C12_inv @ X[b] @ C12_inv  (single Pallas GEMM)
            inner = congruence_lr(C12_inv, C12_inv, X_flat).reshape(B, N, N)

            ev_b, V_b = jnp.linalg.eigh(inner)
            log_m = jnp.einsum('bij,bj,bkj->bik', V_b, jnp.log(ev_b), V_b)
            J = jnp.einsum('b,bij->ij', weights, log_m)

            eJ, VJ = jnp.linalg.eigh(nu * J)
            exp_J = (VJ * jnp.exp(eJ)) @ VJ.T
            new_mean = C12 @ exp_J @ C12

            crit = jnp.linalg.norm(J)                     # Frobenius
            h = nu * crit
            new_nu = jnp.where(h < tau, 0.95 * nu, 0.5 * nu)
            new_tau = jnp.where(h < tau, h, tau)
            new_done = (crit <= tol) | (new_nu <= tol)
            return new_mean, new_nu, new_tau, new_done

        def skip(args):
            mean, nu, tau = args
            return mean, nu, tau, jnp.asarray(True)

        return lax.cond(done, skip, do_iter, (mean, nu, tau))

    nu0 = jnp.asarray(initial_stepsize, dtype)
    tau0 = jnp.asarray(jnp.finfo(dtype).max, dtype)
    done0 = jnp.asarray(False)
    mean, _, _, _ = lax.fori_loop(0, max_iter, body, (mean0, nu0, tau0, done0))
    return mean


# ----------------------------------------------------------------------------
# Forward functions (jitted end-to-end)
# ----------------------------------------------------------------------------
def _forward_train(X_flat, running_mean, bias, *, N, momentum, tol, max_iter,
                   stepsize):
    new_mean = riemannian_mean_spd(
        X_flat, N, initial_stepsize=stepsize, max_iter=max_iter, tol=tol)
    new_running_mean = spd_affine_invariant_geodesic(
        running_mean, new_mean, momentum)

    isqrtm_mean = _inv_sqrtm(new_mean)
    sqrtm_bias = _sqrtm(bias)
    # Fused normalization: sqrtm_bias @ (isqrtm_mean @ X @ isqrtm_mean) @ sqrtm_bias
    #                    = M @ X @ M^T,  M = sqrtm_bias @ isqrtm_mean
    M = sqrtm_bias @ isqrtm_mean
    Y_flat = congruence_lr(M, M.T, X_flat)
    return Y_flat, new_running_mean


def _forward_eval(X_flat, running_mean, bias, *, N):
    isqrtm_mean = _inv_sqrtm(running_mean)
    sqrtm_bias = _sqrtm(bias)
    M = sqrtm_bias @ isqrtm_mean
    return congruence_lr(M, M.T, X_flat)


# ----------------------------------------------------------------------------
# BatchNormSPD module (forward pass only)
# ----------------------------------------------------------------------------
class BatchNormSPD:
    def __init__(self, n_features, momentum=0.1, tol_mean=1e-6,
                 max_iter_mean=5, initial_stepsize_mean=1.0,
                 dtype=jnp.float32):
        self.n_features = n_features
        self.momentum = momentum
        self.tol_mean = tol_mean
        self.max_iter_mean = max_iter_mean
        self.initial_stepsize_mean = initial_stepsize_mean
        self.dtype = dtype
        # Deterministic parameter init (matches the module's __init__: identity)
        self.running_mean = jnp.eye(n_features, dtype=dtype)
        self.bias = jnp.eye(n_features, dtype=dtype)   # ManifoldParameter(eye)
        self.training = True
        self._fwd_train = jax.jit(functools.partial(
            _forward_train, N=n_features, momentum=momentum, tol=tol_mean,
            max_iter=max_iter_mean, stepsize=initial_stepsize_mean))
        self._fwd_eval = jax.jit(functools.partial(_forward_eval, N=n_features))

    def __call__(self, X):
        N = X.shape[-1]
        assert N == self.n_features
        batch_shape = X.shape[:-2]
        X_flat = X.reshape((-1, N * N)).astype(self.dtype)   # row-major vec

        if self.training:
            Y_flat, new_rm = self._fwd_train(X_flat, self.running_mean, self.bias)
            self.running_mean = new_rm     # running-stat update (side effect)
        else:
            Y_flat = self._fwd_eval(X_flat, self.running_mean, self.bias)

        return Y_flat.reshape(batch_shape + (N, N))


# ----------------------------------------------------------------------------
# Demo
# ----------------------------------------------------------------------------
if __name__ == "__main__":
    key = jax.random.PRNGKey(0)
    n_features = 16
    batch_shape = (2, 4)                 # X: (2, 4, 16, 16) SPD matrices

    A = jax.random.normal(key, batch_shape + (n_features, n_features),
                          dtype=jnp.float32)
    # Build well-conditioned SPD inputs: A A^T + 0.5 I
    X = (jnp.einsum('...ij,...kj->...ik', A, A)
         + 0.5 * jnp.eye(n_features, dtype=jnp.float32))

    bn = BatchNormSPD(n_features)
    Y = bn(X)
    Y = jax.block_until_ready(Y)

    assert Y.shape == X.shape and Y.dtype == jnp.float32
    assert bool(jnp.all(jnp.isfinite(Y)))
    print("KERNEL_OK")
</pallas_src>

<mosaic_0001>
module attributes {stable_mosaic.version = 11 : i64} {
  func.func @_kron_gemm_kernel(%arg0: i32, %arg1: memref<256x256xf32, #tpu.memory_space<vmem>>, %arg2: memref<8x256xf32, #tpu.memory_space<vmem>>, %arg3: memref<8x256xf32, #tpu.memory_space<vmem>>) attributes {dimension_semantics = [#tpu.dimension_semantics<parallel>], iteration_bounds = array<i64: 1>, scalar_prefetch = 0 : i64, scratch_operands = 0 : i64, tpu.core_type = #tpu.core_type<tc>, window_params = [{pipeline_mode = #tpu.pipeline_mode<synchronous>, transform_indices = @transform_0, window_bounds = array<i64: 256, 256>}, {transform_indices = @transform_1, window_bounds = array<i64: 8, 256>}, {transform_indices = @transform_2, window_bounds = array<i64: 8, 256>}]} {
    %c0 = arith.constant 0 : index
    %c0_0 = arith.constant 0 : index
    %0 = vector.load %arg2[%c0, %c0_0] : memref<8x256xf32, #tpu.memory_space<vmem>>, vector<8x256xf32>
    %c0_1 = arith.constant 0 : index
    %c0_2 = arith.constant 0 : index
    %1 = vector.load %arg1[%c0_1, %c0_2] : memref<256x256xf32, #tpu.memory_space<vmem>>, vector<256x256xf32>
    %cst = arith.constant dense<0.000000e+00> : vector<8x256xf32>
    %2 = tpu.matmul %0, %1, %cst {dimension_numbers = #tpu.dot_dimension_numbers<[1], [0], [0], [1], [0, 0, 1, 1], [], []>} : vector<8x256xf32>, vector<256x256xf32>, vector<8x256xf32> -> vector<8x256xf32>
    %c0_3 = arith.constant 0 : index
    %c0_4 = arith.constant 0 : index
    %3 = vector.load %arg3[%c0_3, %c0_4] : memref<8x256xf32, #tpu.memory_space<vmem>>, vector<8x256xf32>
    tpu.vector_store %arg3[%c0_3, %c0_4], %2 {strides = array<i32>} : memref<8x256xf32, #tpu.memory_space<vmem>>, vector<8x256xf32>,
    return
  }
  func.func @transform_0(%arg0: i32) -> (i32, i32) {
    %c0_i32 = arith.constant 0 : i32
    %c0_i32_0 = arith.constant 0 : i32
    %c0_i32_1 = arith.constant 0 : i32
    return %c0_i32, %c0_i32_0 : i32, i32
  }
  func.func @transform_1(%arg0: i32) -> (i32, i32) {
    %c0_i32 = arith.constant 0 : i32
    %c0_i32_0 = arith.constant 0 : i32
    return %arg0, %c0_i32 : i32, i32
  }
  func.func @transform_2(%arg0: i32) -> (i32, i32) {
    %c0_i32 = arith.constant 0 : i32
    %c0_i32_0 = arith.constant 0 : i32
    return %arg0, %c0_i32 : i32, i32
  }
}

module attributes {stable_mosaic.version = 11 : i64} {
  func.func @_kron_gemm_kernel(%arg0: i32, %arg1: memref<256x256xf32, #tpu.memory_space<vmem>>, %arg2: memref<8x256xf32, #tpu.memory_space<vmem>>, %arg3: memref<8x256xf32, #tpu.memory_space<vmem>>) attributes {dimension_semantics = [#tpu.dimension_semantics<parallel>], iteration_bounds = array<i64: 1>, scalar_prefetch = 0 : i64, scratch_operands = 0 : i64, tpu.core_type = #tpu.core_type<tc>, window_params = [{pipeline_mode = #tpu.pipeline_mode<synchronous>, transform_indices = @transform_0, window_bounds = array<i64: 256, 256>}, {transform_indices = @transform_1, window_bounds = array<i64: 8, 256>}, {transform_indices = @transform_2, window_bounds = array<i64: 8, 256>}]} {
    %c0 = arith.constant 0 : index
    %c0_0 = arith.constant 0 : index
    %0 = vector.load %arg2[%c0, %c0_0] : memref<8x256xf32, #tpu.memory_space<vmem>>, vector<8x256xf32>
    %c0_1 = arith.constant 0 : index
    %c0_2 = arith.constant 0 : index
    %1 = vector.load %arg1[%c0_1, %c0_2] : memref<256x256xf32, #tpu.memory_space<vmem>>, vector<256x256xf32>
    %cst = arith.constant dense<0.000000e+00> : vector<8x256xf32>
    %2 = tpu.matmul %0, %1, %cst {dimension_numbers = #tpu.dot_dimension_numbers<[1], [0], [0], [1], [0, 0, 1, 1], [], []>} : vector<8x256xf32>, vector<256x256xf32>, vector<8x256xf32> -> vector<8x256xf32>
    %c0_3 = arith.constant 0 : index
    %c0_4 = arith.constant 0 : index
    %3 = vector.load %arg3[%c0_3, %c0_4] : memref<8x256xf32, #tpu.memory_space<vmem>>, vector<8x256xf32>
    tpu.vector_store %arg3[%c0_3, %c0_4], %2 {strides = array<i32>} : memref<8x256xf32, #tpu.memory_space<vmem>>, vector<8x256xf32>,
    return
  }
  func.func @transform_0(%arg0: i32) -> (i32, i32) {
    %c0_i32 = arith.constant 0 : i32
    %c0_i32_0 = arith.constant 0 : i32
    %c0_i32_1 = arith.constant 0 : i32
    return %c0_i32, %c0_i32_0 : i32, i32
  }
  func.func @transform_1(%arg0: i32) -> (i32, i32) {
    %c0_i32 = arith.constant 0 : i32
    %c0_i32_0 = arith.constant 0 : i32
    return %arg0, %c0_i32 : i32, i32
  }
  func.func @transform_2(%arg0: i32) -> (i32, i32) {
    %c0_i32 = arith.constant 0 : i32
    %c0_i32_0 = arith.constant 0 : i32
    return %arg0, %c0_i32 : i32, i32
  }
}

</mosaic_0001>

<bundles_post_ra>
// kernel: custom-call.14
= control target key start
LH: loop header
LB: loop body
LE: loop exit
PB: predicated region body
PF: predicated region fallthrough
CT: control target
= control target key end

     0   :  { %s2375_s30 = smov [#allocation0]   ;;  %s2724_s0 = inlined_call_operand.vmem [shape: f32[8,8], index: 0, kind: input, shape index: {}]   ;;  %s2725_s1 = inlined_call_operand.vmem [shape: f32[8,8], index: 1, kind: input, shape index: {}]   ;;  %s2726_s2 = inlined_call_operand.vmem [shape: f32[8,8], index: 2, kind: input, shape index: {}]   ;;  %s2727_s3 = inlined_call_operand.vmem [shape: f32[8,8], index: 3, kind: input, shape index: {}]   ;;  %s2728_s4 = inlined_call_operand.vmem [shape: f32[8], index: 4, kind: output, shape index: {0}]   ;;  %s2729_s5 = inlined_call_operand.vmem [shape: f32[8], index: 5, kind: output, shape index: {1}]   ;;  %s2730_s6 = inlined_call_operand.vmem [shape: f32[8,8], index: 6, kind: output, shape index: {2}]   ;;  %s2731_s7 = inlined_call_operand.vmem [shape: f32[8,8], index: 7, kind: output, shape index: {3}]   ;;  %s2732_s8 = inlined_call_operand.vmem [shape: f32[8,8], index: 8, kind: output, shape index: {4}]   ;;  %s2733_s9 = inlined_call_operand.vmem [shape: f32[8,8], index: 9, kind: output, shape index: {5}]  }
   0x1   :  { %s2379_s12 = smov %s2724_s0  }
   0x2 LB: > { %v58_v0 = vld [vmem:[%s2381_s12] sm:$0xff]  ;;  %s60_s12 = scalar_lea.vmem %s2381_s12, 8   ;;  %s2381_s12 = sphi %s2379_s12, %s60_s12   ;;  %s2377_s30 = sphi %s2375_s30, %s61_s30  }
   0x3   : > { %59 = vst [vmem:[%s2377_s30] sm:$0xff] %v58_v0  ;;  %s61_s30 = scalar_lea.vmem %s2377_s30, 8   ;;  %p55_p0 = scmp.gt.s32.totalorder %s60_s12, %s2724_s0 }
   0x4   :  { %s2383_s15 = smov (%p55_p0), [#allocation1]   ;;  %s2387_s18 = smov (%p55_p0), %s2725_s1  }
   0x5   :  { %57 = sbr.rel (!%p55_p0) target bundleno = 2 (0x2), region = 358 }
   0xc LB: > { %v120_v1 = vld [vmem:[%s2389_s18] sm:$0xff]  ;;  %s122_s18 = scalar_lea.vmem %s2389_s18, 8   ;;  %s2389_s18 = sphi %s2387_s18, %s122_s18   ;;  %s2385_s15 = sphi %s2383_s15, %s123_s15  }
   0xd   : > { %121 = vst [vmem:[%s2385_s15] sm:$0xff] %v120_v1  ;;  %s123_s15 = scalar_lea.vmem %s2385_s15, 8   ;;  %p117_p1 = scmp.gt.s32.totalorder %s122_s18, %s2725_s1 }
   0xe   :  { %s2391_s0 = smov (%p117_p1), [#allocation2]   ;;  %s2395_s23 = smov (%p117_p1), %s2726_s2  }
   0xf   :  { %119 = sbr.rel (!%p117_p1) target bundleno = 12 (0xc), region = 380 }
  0x16 LB: > { %v182_v2 = vld [vmem:[%s2397_s23] sm:$0xff]  ;;  %s184_s23 = scalar_lea.vmem %s2397_s23, 8   ;;  %s2397_s23 = sphi %s2395_s23, %s184_s23   ;;  %s2393_s0 = sphi %s2391_s0, %s185_s0  }
  0x17   : > { %183 = vst [vmem:[%s2393_s0] sm:$0xff] %v182_v2  ;;  %s185_s0 = scalar_lea.vmem %s2393_s0, 8   ;;  %p179_p2 = scmp.gt.s32.totalorder %s184_s23, %s2726_s2 }
  0x18   :  { %s2399_s1 = smov (%p179_p2), [#allocation3]   ;;  %s2403_s28 = smov (%p179_p2), %s2727_s3  }
  0x19   :  { %181 = sbr.rel (!%p179_p2) target bundleno = 22 (0x16), region = 402 }
  0x20 LB: > { %v244_v3 = vld [vmem:[%s2405_s28] sm:$0xff]  ;;  %s246_s28 = scalar_lea.vmem %s2405_s28, 8   ;;  %s2405_s28 = sphi %s2403_s28, %s246_s28   ;;  %s2401_s1 = sphi %s2399_s1, %s247_s1  }
  0x21   : > { %245 = vst [vmem:[%s2401_s1] sm:$0xff] %v244_v3  ;;  %s247_s1 = scalar_lea.vmem %s2401_s1, 8   ;;  %p241_p3 = scmp.gt.s32.totalorder %s246_s28, %s2727_s3 }
  0x22   :  { %s259_s2 = smov (%p241_p3), [#allocation12]  ;;  %v260_v4 = vld [vmem:[#allocation0] sm:$0xff] (%p241_p3)  ;;  %s262_s10 = smov (%p241_p3), [#allocation13]  ;;  %v263_v5 = vld [vmem:[#allocation1] sm:$0xff] (%p241_p3)  ;;  %v266_v6 = vld [vmem:[#allocation2] sm:$0xff] (%p241_p3)  ;;  %v276_v7 = vlaneseq (%p241_p3)  ;;  %v2447_v9 = vmov (%p241_p3), 0.0  }
  0x23   :  { %243 = sbr.rel (!%p241_p3) target bundleno = 32 (0x20), region = 424  ;;  %261 = vst [vmem:[%s259_s2] sm:$0xff] (%p241_p3), %v260_v4  ;;  %264 = vst [vmem:[%s262_s10] sm:$0xff] (%p241_p3), %v263_v5  ;;  %s265_s11 = smov (%p241_p3), [#allocation14] }
  0x24   :  { %s268_s12 = smov (%p241_p3), [#allocation15]  ;;  %271 = vst [vmem:[#allocation8] sm:$0xff] (%p241_p3), %v2447_v9  ;;  %272 = vst [vmem:[#allocation9] sm:$0xff] (%p241_p3), %v2447_v9  ;;  %v2524_v10 = vand.u32 (%p241_p3), 127, %v276_v7  ;;  %v2526_v11 = vshrl.u32 (%p241_p3), %v276_v7, 7  ;;  %s275_s3 = smov (%p241_p3), [#allocation8] }
  0x25   :  { %273 = vst [vmem:[#allocation10] sm:$0xff] (%p241_p3), %v2447_v9  ;;  %274 = vst [vmem:[#allocation11] sm:$0xff] (%p241_p3), %v2447_v9  ;;  %s288_s13 = smov (%p241_p3), [#allocation11]  ;;  %s1401_s14 = smov (%p241_p3), [#allocation12] }
  0x26   :  { %267 = vst [vmem:[%s265_s11] sm:$0xff] (%p241_p3), %v266_v6  ;;  %v278_v10 = vmov (%p241_p3), %v2524_v10  ;;  %v281_v11 = vmov (%p241_p3), %v2526_v11  ;;  %vm1405_vm2 = vcmp.lt.s32.totalorder (%p241_p3), %v2524_v10, 8  ;;  %s1418_s15 = smov (%p241_p3), [#allocation13]  ;;  %s1435_s16 = smov (%p241_p3), [#allocation14] }
  0x27   :  { %v291_v10 = vmov (%p241_p3), %v2524_v10  ;;  %v294_v11 = vmov (%p241_p3), %v2526_v11  ;;  %vm285_vm0 = vcmp.eq.s32.totalorder (%p241_p3), %v281_v11, %v278_v10  ;;  %s1452_s17 = smov (%p241_p3), [#allocation15] }
  0x28   :  { %v269_v8 = vld [vmem:[#allocation3] sm:$0xff] (%p241_p3)  ;;  %vm298_vm1 = vcmp.eq.s32.totalorder (%p241_p3), %v294_v11, %v291_v10  ;;  %v1397_v10 = vmov (%p241_p3), %v2524_v10  ;;  %v1400_v11 = vmov (%p241_p3), %v2526_v11 }
  0x29   :  { %270 = vst [vmem:[%s268_s12] sm:$0xff] (%p241_p3), %v269_v8  ;;  %vm1410_vm3 = vcmp.eq.s32.totalorder (%p241_p3), %v1400_v11, %v1397_v10  ;;  %v1448_v10 = vmov (%p241_p3), %v2524_v10  ;;  %v1417_v11 = vmov (%p241_p3), %v2526_v11 }
  0x2a   :  { %v1407_v16 = vld [vmem:[%s1401_s14] sm:$0xff]  ;;  %v1414_v10 = vmov %v2524_v10  ;;  %v1451_v11 = vmov %v2526_v11 }
  0x2b   :  { %v282_v12 = vld [vmem:[%s275_s3] sm:$0xff]  ;;  %v1408_v18 = vsel %vm1405_vm2, %v1407_v16, 0.0  ;;  %v1431_v10 = vmov %v2524_v10  ;;  %v1434_v11 = vmov %v2526_v11  ;;  %vm1461_vm4 = vcmp.eq.s32.totalorder %v1451_v11, %v1448_v10 }
  0x2c   :  { %v295_v13 = vld [vmem:[%s288_s13] sm:$0xff]  ;;  %v286_v14 = vsel %vm285_vm0, 1.0, %v282_v12  ;;  %v1409_v22 = vmul.f32 %v1408_v18, %v1408_v18 }
  0x2d   :  { %v299_v15 = vsel %vm298_vm1, 1.0, %v295_v13  ;;  %287 = vst [vmem:[%s275_s3] sm:$0xff] %v286_v14  ;;  %v1424_v17 = vld [vmem:[%s1418_s15] sm:$0xff] }
  0x2e   :  { %300 = vst [vmem:[%s288_s13] sm:$0xff] %v299_v15  ;;  %v1425_v19 = vsel %vm1405_vm2, %v1424_v17, 0.0  ;;  %v1441_v20 = vld [vmem:[%s1435_s16] sm:$0xff]  ;;  %v1411_v29 = vsel %vm1410_vm3, 0.0, %v1409_v22 }
  0x2f   :  { %v1426_v23 = vmul.f32 %v1425_v19, %v1425_v19  ;;  %v1442_v24 = vsel %vm1405_vm2, %v1441_v20, 0.0 }
  0x30   :  { %v1458_v21 = vld [vmem:[%s1452_s17] sm:$0xff]  ;;  %v1443_v26 = vmul.f32 %v1442_v24, %v1442_v24 }
  0x31   :  { %v1459_v25 = vsel %vm1405_vm2, %v1458_v21, 0.0  ;;  %v1428_v27 = vadd.f32 %v1426_v23, %v1409_v22  ;;  %v1427_v30 = vadd.f32 %v1426_v23, %v1411_v29 }
  0x32   :  { %v1460_v28 = vmul.f32 %v1459_v25, %v1459_v25 }
  0x33   :  { %v1445_v31 = vadd.f32 %v1443_v26, %v1428_v27  ;;  %v1444_v32 = vadd.f32 %v1443_v26, %v1427_v30 }
  0x34   :  { %v1462_v33 = vsel %vm1461_vm4, 0.0, %v1460_v28 }
  0x35   :  { %v1464_v34 = vadd.f32 %v1460_v28, %v1445_v31  ;;  %v1463_v35 = vadd.f32 %v1462_v33, %v1444_v32 }
  0x37   :  { %1465 = vadd.xlane.f32.xlu0 %v1464_v34 }
  0x3b   :  { %1473 = vadd.xlane.f32.xlu0 %v1463_v35 }
  0xc4   :  { %v1466_v36 = vpop.xlane.xlu0 %1465 }
  0xc5   :  { %v1467_v37 = vrot.slane %v1466_v36, 4 }
  0xc7   :  { %v1468_v38 = vadd.f32 %v1467_v37, %v1466_v36 }
  0xc8   :  { %v1474_v39 = vpop.xlane.xlu0 %1473 }
  0xc9   :  { %v1469_v40 = vrot.slane %v1468_v38, 2  ;;  %v1475_v41 = vrot.slane %v1474_v39, 4 }
  0xcb   :  { %v1476_v42 = vadd.f32 %v1475_v41, %v1474_v39  ;;  %v1470_v43 = vadd.f32 %v1469_v40, %v1468_v38 }
  0xcd   :  { %v1477_v44 = vrot.slane %v1476_v42, 2  ;;  %v1471_v46 = vrot.slane %v1470_v43, 1 }
  0xcf   :  { %v1478_v45 = vadd.f32 %v1477_v44, %v1476_v42  ;;  %v1472_v49 = vadd.f32 %v1471_v46, %v1470_v43 }
  0xd1   :  { %v1479_v47 = vrot.slane %v1478_v45, 1 }
  0xd3   :  { %v1480_v48 = vadd.f32 %v1479_v47, %v1478_v45 }
  0xd5   :  { %1656 = vpush %v1480_v48 }
  0xd6   :  { %1658 = vpush %v1472_v49 }
 0x106   :  { %s1657_s18 = spop %1656 }
 0x107   :  { %s1659_s19 = spop %1658 }
 0x108   :  { %s1483_s20 = smul.f32 1e-10, %s1659_s19 }
 0x10a   :  { %p1484_p4 = scmp.le.f32.partialorder %s1657_s18, %s1483_s20 }
 0x10b   :  { %s2550_s0 = smov (!%p1484_p4), 0  }
 0x10c   :  { %1487 = sbr.rel (%p1484_p4) target bundleno = 950 (0x3b6), region = 440 }
 0x113 LB: > { %s2555_s21 = smov 0   ;;  %s2409_s0 = sphi %s2550_s0, %s2734_s0  }
 0x114 LB: >> { %s405_s22 = smov [#allocation12]  ;;  %v409_v10 = vmov %v2524_v10  ;;  %v412_v11 = vmov %v2526_v11  ;;  %s425_s23 = smov [#allocation13]  ;;  %vm728_vm14 = vcmp.eq.s32.totalorder %v2526_v11, 0  ;;  %vm740_vm15 = vcmp.eq.s32.totalorder %v2526_v11, 7  ;;  %s2413_s21 = sphi %s2555_s21, %s404_s21  }
 0x115   : >> { %v429_v10 = vmov %v2524_v10  ;;  %v432_v11 = vmov %v2526_v11  ;;  %v413_v50 = vld [vmem:[%s405_s22] sm:$0xff]  ;;  %vm416_vm5 = vcmp.eq.s32.totalorder %v412_v11, %v409_v10  ;;  %s445_s24 = smov [#allocation15]  ;;  %s406_s25 = smov [#allocation16] }
 0x116   : >> { %vm436_vm6 = vcmp.eq.s32.totalorder %v432_v11, %v429_v10  ;;  %v449_v10 = vmov %v2524_v10  ;;  %v452_v11 = vmov %v2526_v11  ;;  %v417_v51 = vsel %vm416_vm5, %v413_v50, 0.0  ;;  %v433_v52 = vld [vmem:[%s425_s23] sm:$0xff]  ;;  %s426_s1 = smov [#allocation17]  ;;  %s446_s26 = smov [#allocation18] }
 0x117   : >> { %vm456_vm7 = vcmp.eq.s32.totalorder %v452_v11, %v449_v10  ;;  %v418_v53 = vrot.slane %v417_v51, 4  ;;  %v437_v54 = vsel %vm436_vm6, %v433_v52, 0.0  ;;  %v453_v55 = vld [vmem:[%s445_s24] sm:$0xff]  ;;  %s469_s27 = smov [#allocation17]  ;;  %s467_s28 = smov [#allocation16]  ;;  %v518_v10 = vmov %v2524_v10 }
 0x118   : >> { %v438_v56 = vrot.slane %v437_v54, 4  ;;  %v457_v57 = vsel %vm456_vm7, %v453_v55, 0.0  ;;  %s471_s29 = smov [#allocation18]  ;;  %s506_s30 = smov [#allocation19]  ;;  %v521_v11 = vmov %v2526_v11  ;;  %v533_v10 = vmov %v2524_v10 }
 0x119   : >> { %v419_v58 = vadd.f32 %v418_v53, %v417_v51  ;;  %v458_v59 = vrot.slane %v457_v57, 4  ;;  %s508_s2 = smov [#allocation20]  ;;  %s465_s10 = smov [#allocation21]  ;;  %v536_v11 = vmov %v2526_v11  ;;  %vm523_vm12 = vcmp.eq.s32.totalorder %v521_v11, %v518_v10 }
 0x11a   : >> { %v439_v60 = vadd.f32 %v438_v56, %v437_v54  ;;  %s466_s11 = smov [#allocation22]  ;;  %s510_s10 = smov %s465_s10  ;;  %vm538_vm13 = vcmp.eq.s32.totalorder %v536_v11, %v533_v10  ;;  %v631_v10 = vmov %v2524_v10  ;;  %v634_v11 = vmov %v2526_v11 }
 0x11b   : >> { %v420_v61 = vrot.slane %v419_v58, 2  ;;  %v459_v62 = vadd.f32 %v458_v59, %v457_v57  ;;  %s512_s11 = smov %s466_s11  ;;  %s514_s12 = smov [#allocation21]  ;;  %v604_v10 = vmov %v2524_v10  ;;  %v607_v11 = vmov %v2526_v11 }
 0x11c   : >> { %v440_v63 = vrot.slane %v439_v60, 2  ;;  %s529_s3 = smov [#allocation22]  ;;  %s527_s13 = smov [#allocation23]  ;;  %v645_v10 = vmov %v2524_v10  ;;  %v648_v11 = vmov %v2526_v11  ;;  %vm638_vm0 = vcmp.eq.s32.totalorder %v634_v11, %v631_v10 }
 0x11d   : >> { %v421_v0 = vadd.f32 %v420_v61, %v419_v58  ;;  %v460_v1 = vrot.slane %v459_v62, 2  ;;  %s544_s14 = smov [#allocation23]  ;;  %s2570_s15 = smov [#allocation12]  ;;  %v618_v10 = vmov %v2524_v10  ;;  %v621_v11 = vmov %v2526_v11 }
 0x11e   : >> { %v441_v2 = vadd.f32 %v440_v63, %v439_v60  ;;  %s542_s16 = smov [#allocation24]  ;;  %s2572_s17 = smov [#allocation13]  ;;  %v552_v49 = vld [vmem:[%s2570_s15] sm:$0xff]  ;;  %vm612_vm1 = vcmp.eq.s32.totalorder %v607_v11, %v604_v10  ;;  %vm653_vm3 = vcmp.eq.s32.totalorder %v648_v11, %v645_v10  ;;  %vm625_vm4 = vcmp.eq.s32.totalorder %v621_v11, %v618_v10 }
 0x11f   : >> { %v422_v3 = vrot.slane %v421_v0, 1  ;;  %v461_v4 = vadd.f32 %v460_v1, %v459_v62  ;;  %s2574_s18 = smov [#allocation15]  ;;  %s768_s19 = smov [#allocation23]  ;;  %v553_v50 = vld [vmem:[%s2572_s17] sm:$0xff]  ;;  %vm667_vm5 = vcmp.eq.s32.totalorder %v2524_v10, 0  ;;  %vm671_vm6 = vcmp.eq.s32.totalorder %v2524_v10, 1 }
 0x120   : >> { %v442_v5 = vrot.slane %v441_v2, 1  ;;  %s2576_s20 = smov [#allocation8]  ;;  %s2578_s22 = smov [#allocation9]  ;;  %v555_v51 = vld [vmem:[%s2574_s18] sm:$0xff]  ;;  %vm684_vm7 = vcmp.eq.s32.totalorder %v2524_v10, 7 }
 0x121   : >> { %v423_v6 = vadd.f32 %v422_v3, %v421_v0  ;;  %v462_v7 = vrot.slane %v461_v4, 1  ;;  %s2580_s23 = smov [#allocation10]  ;;  %s2583_s24 = smov [#allocation11]  ;;  %v776_v52 = vld [vmem:[%s2576_s20] sm:$0xff] }
 0x122   : >> { %v443_v8 = vadd.f32 %v442_v5, %v441_v2  ;;  %v777_v53 = vld [vmem:[%s2578_s22] sm:$0xff]  ;;  %s404_s21 = sadd.s32 1, %s2413_s21  }
 0x123   : >> { %424 = vst [vmem:[%s406_s25] sm:$0x1] %v423_v6  ;;  %v463_v9 = vadd.f32 %v462_v7, %v461_v4  ;;  %s2585_s25 = smov [#allocation14]  ;;  %v778_v56 = vld [vmem:[%s2580_s23] sm:$0xff]  ;;  %p401_p5 = scmp.ge.s32.totalorder %s404_s21, 15  }
 0x124   : >> { %444 = vst [vmem:[%s426_s1] sm:$0x1] %v443_v8  ;;  %v779_v57 = vld [vmem:[%s2583_s24] sm:$0xff]  ;;  %s546_s1 = smov [#allocation24]  ;;  %v305_v10 = vmov (%p401_p5), %v2524_v10  ;;  %v308_v11 = vmov (%p401_p5), %v2526_v11 }
 0x125   : >> { %464 = vst [vmem:[%s446_s26] sm:$0x1] %v463_v9  ;;  %s770_s26 = smov [#allocation24]  ;;  %v554_v58 = vld [vmem:[%s2585_s25] sm:$0xff]  ;;  %v358_v10 = vmov (%p401_p5), %v2524_v10 }
 0x12a   : >> { %v468_v14 = vld [vmem:[%s467_s28] sm:$0xff]  ;;  %s797_s28 = smov [#allocation10] }
 0x12b   : >> { %v470_v12 = vld [vmem:[%s469_s27] sm:$0xff]  ;;  %v491_v27 = vand.u32 2147483647, %v468_v14  ;;  %s796_s27 = smov [#allocation8] }
 0x12c   : >> { %v474_v13 = vmul.f32 2.0, %v470_v12  ;;  %v472_v15 = vld [vmem:[%s471_s29] sm:$0xff]  ;;  %v492_v32 = vand.u32 2147483647, %v470_v12  ;;  %s572_s29 = smov [#allocation21] }
 0x12d   : >> { %v473_v16 = vsub.f32 %v472_v15, %v468_v14  ;;  %v493_v28 = vand.u32 2147483647, %v472_v15 }
 0x12e   : >> { %2135 = vrcp.f32 %v474_v13 }
 0x12f   : >> { %v494_v31 = vmin.f32 %v491_v27, %v493_v28 }
 0x131   : >> { %v495_v33 = vmul.f32 1.1920929e-08, %v494_v31 }
 0x133   : >> { %vm496_vm11 = vcmp.le.f32.partialorder %v492_v32, %v495_v33 }
 0x138   : >> { %v2136_v17 = vpop.eup %2135 }
 0x139   : >> { %v476_v18 = vmul.f32 %v2136_v17, %v473_v16 }
 0x13b   : >> { %v478_v19 = vmul.f32 %v476_v18, %v476_v18  ;;  %vm477_vm10 = vcmp.ge.f32.partialorder %v476_v18, 0.0 }
 0x13d   : >> { %v479_v20 = vadd.f32 1.0, %v478_v19 }
 0x13f   : >> { %2137 = vrsqrt.f32 %v479_v20  ;;  %vm482_vm8 = vcmp.eq.f32.partialorder %v479_v20, inf  ;;  %v485_v22 = vand.u32 2147483648, %v479_v20  ;;  %vm484_vm9 = vcmp.eq.f32.partialorder %v479_v20, 0.0 }
 0x149   : >> { %v2138_v21 = vpop.eup %2137 }
 0x14a   : >> { %v481_v23 = vmul.f32 %v2138_v21, %v479_v20 }
 0x14c   : >> { %v483_v24 = vsel %vm482_vm8, %v479_v20, %v481_v23  ;;  %vm320_vm8 = vcmp.eq.s32.totalorder (%p401_p5), %v308_v11, %v305_v10  ;;  %v361_v11 = vmov (%p401_p5), %v2526_v11  ;;  %v324_v10 = vmov (%p401_p5), %v2524_v10 }
 0x14d   : >> { %v486_v25 = vsel %vm484_vm9, %v485_v22, %v483_v24  ;;  %v327_v11 = vmov (%p401_p5), %v2526_v11  ;;  %v341_v10 = vmov (%p401_p5), %v2524_v10  ;;  %vm373_vm9 = vcmp.eq.s32.totalorder (%p401_p5), %v361_v11, %v358_v10 }
 0x14e   : >> { %v487_v26 = vxor.u32 2147483648, %v486_v25  ;;  %v344_v11 = vmov (%p401_p5), %v2526_v11 }
 0x150   : >> { %v488_v29 = vsel %vm477_vm10, %v486_v25, %v487_v26 }
 0x151   : >> { %v489_v30 = vadd.f32 %v488_v29, %v476_v18 }
 0x153   : >> { %2139 = vrcp.f32 %v489_v30 }
 0x15d   : >> { %v2140_v34 = vpop.eup %2139 }
 0x15e   : >> { %v497_v35 = vsel %vm496_vm11, 0.0, %v2140_v34 }
 0x15f   : >> { %v498_v36 = vmul.f32 %v497_v35, %v497_v35  ;;  %v502_v37 = vmul.f32 %v497_v35, %v470_v12 }
 0x161   : >> { %v499_v38 = vadd.f32 1.0, %v498_v36  ;;  %v503_v39 = vsub.f32 %v468_v14, %v502_v37  ;;  %v505_v40 = vadd.f32 %v502_v37, %v472_v15 }
 0x163   : >> { %2141 = vrsqrt.f32 %v499_v38  ;;  %507 = vst [vmem:[%s506_s30] sm:$0xff] %v503_v39  ;;  %509 = vst [vmem:[%s508_s2] sm:$0xff] %v505_v40  ;;  %s574_s30 = smov [#allocation22]  ;;  %s2602_s2 = smov [#allocation9] }
 0x16d   : >> { %v2142_v41 = vpop.eup %2141 }
 0x16e   : >> { %511 = vst [vmem:[%s510_s10] sm:$0xff] %v2142_v41  ;;  %v501_v42 = vmul.f32 %v2142_v41, %v497_v35  ;;  %s2604_s10 = smov [#allocation11] }
 0x170   : >> { %513 = vst [vmem:[%s512_s11] sm:$0xff] %v501_v42  ;;  %s2608_s11 = smov [#allocation14] }
 0x175   : >> { %v515_v43 = vld [vmem:[%s514_s12] ss:$0 sm:$0xff]  ;;  %s2610_s12 = smov [#allocation15] }
 0x176   : >> { %v524_v44 = vsel %vm523_vm12, %v515_v43, 0.0  ;;  %v573_v23 = vld [vmem:[%s572_s29] ss:$0 sm:$0xff]  ;;  %s745_s29 = smov [#allocation15] }
 0x177   : >> { %525 = vadd.xlane.f32.xlu0 %v524_v44  ;;  %v530_v45 = vld [vmem:[%s529_s3] ss:$0 sm:$0xff]  ;;  %s2612_s3 = smov [#allocation12] }
 0x178   : >> { %v539_v46 = vsel %vm538_vm13, %v530_v45, 0.0  ;;  %v575_v24 = vld [vmem:[%s574_s30] ss:$0 sm:$0xff]  ;;  %s844_s30 = sadd.s32 (%p401_p5), 1, %s2409_s0  }
 0x179   : > { %p397_p6 = scmp.ge.s32.totalorder (%p401_p5), %s844_s30, 15  ;;  %s2734_s0 = smov (%p401_p5), %s844_s30 }
 0x17b   : >> { %540 = vadd.xlane.f32.xlu0 %v539_v46 }
 0x204   : >> { %v526_v47 = vpop.xlane.xlu0 %525 }
 0x205   : >> { %528 = vst [vmem:[%s527_s13] sm:$0xff] %v526_v47  ;;  %s2614_s13 = smov [#allocation13] }
 0x208   : >> { %v541_v48 = vpop.xlane.xlu0 %540 }
 0x209   : >> { %543 = vst [vmem:[%s542_s16] sm:$0xff] %v541_v48  ;;  %s628_s16 = smov [#allocation14] }
 0x20c   : >> { %v545_v54 = vld [vmem:[%s544_s14] sm:$0xff]  ;;  %s601_s14 = smov [#allocation19] }
 0x20d   : >> { %v769_v55 = vld [vmem:[%s768_s19] sm:$0xff]  ;;  %v556_v59 = vmul.f32 %v552_v49, %v545_v54  ;;  %v559_v60 = vmul.f32 %v553_v50, %v545_v54  ;;  %v566_v61 = vmul.f32 %v555_v51, %v545_v54  ;;  %v563_v4 = vmul.f32 %v554_v58, %v545_v54  ;;  %s615_s19 = smov [#allocation13] }
 0x20e   : >> { %v780_v62 = vmul.f32 %v776_v52, %v769_v55  ;;  %v783_v63 = vmul.f32 %v777_v53, %v769_v55  ;;  %v787_v0 = vmul.f32 %v778_v56, %v769_v55  ;;  %v790_v1 = vmul.f32 %v779_v57, %v769_v55  ;;  %v608_v55 = vld [vmem:[%s601_s14] ss:$0 sm:$0xff] }
 0x210   : >> { %v547_v2 = vld [vmem:[%s546_s1] sm:$0xff]  ;;  %s2651_s1 = smov [#allocation15] }
 0x211   : >> { %v771_v3 = vld [vmem:[%s770_s26] sm:$0xff]  ;;  %v560_v5 = vmul.f32 %v555_v51, %v547_v2  ;;  %v562_v6 = vmul.f32 %v552_v49, %v547_v2  ;;  %v565_v7 = vmul.f32 %v553_v50, %v547_v2  ;;  %v557_v14 = vmul.f32 %v554_v58, %v547_v2  ;;  %s720_s26 = smov [#allocation12] }
 0x212   : >> { %v781_v8 = vmul.f32 %v778_v56, %v771_v3  ;;  %v784_v9 = vmul.f32 %v779_v57, %v771_v3  ;;  %v786_v12 = vmul.f32 %v776_v52, %v771_v3  ;;  %v789_v13 = vmul.f32 %v777_v53, %v771_v3 }
 0x213   : >> { %v561_v15 = vsub.f32 %v559_v60, %v560_v5  ;;  %v567_v16 = vadd.f32 %v566_v61, %v565_v7  ;;  %v564_v18 = vadd.f32 %v563_v4, %v562_v6  ;;  %v558_v22 = vsub.f32 %v556_v59, %v557_v14 }
 0x214   : >> { %v782_v17 = vsub.f32 %v780_v62, %v781_v8  ;;  %v785_v19 = vsub.f32 %v783_v63, %v784_v9  ;;  %v788_v20 = vadd.f32 %v787_v0, %v786_v12  ;;  %v791_v21 = vadd.f32 %v790_v1, %v789_v13 }
 0x215   : >> { %569 = vst [vmem:[%s2572_s17] sm:$0xff] %v561_v15  ;;  %571 = vst [vmem:[%s2574_s18] sm:$0xff] %v567_v16  ;;  %s600_s17 = smov [#allocation12]  ;;  %s641_s18 = smov [#allocation15] }
 0x216   : >> { %792 = vst [vmem:[%s2576_s20] sm:$0xff] %v782_v17  ;;  %570 = vst [vmem:[%s2585_s25] sm:$0xff] %v564_v18  ;;  %s2648_s20 = smov [#allocation14]  ;;  %s2449_s25 = smov 127  }
 0x217   : >> { %793 = vst [vmem:[%s2578_s22] sm:$0xff] %v785_v19  ;;  %794 = vst [vmem:[%s2580_s23] sm:$0xff] %v788_v20  ;;  %s656_s22 = smov [#allocation12]  ;;  %s2448_s23 = smov 1  }
 0x218   : >> { %795 = vst [vmem:[%s2583_s24] sm:$0xff] %v791_v21  ;;  %568 = vst [vmem:[%s2570_s15] sm:$0xff] %v558_v22  ;;  %s642_s15 = smov [#allocation20]  ;;  %s657_s24 = smov [#allocation13] }
 0x219   : >> { %v649_v56 = vld [vmem:[%s642_s15] ss:$0 sm:$0xff] }
 0x21c   : >> { %v583_v39 = vld [vmem:[%s2610_s12] sm:$0xff] }
 0x21d   : >> { %v798_v25 = vld [vmem:[%s796_s27] ss:$0 sm:$0xff]  ;;  %v1627_v27 = vld [vmem:[%s796_s27 + $0x7] ss:$0 sm:$0xff]  ;;  %v591_v42 = vmul.f32 %v583_v39, %v575_v24  ;;  %v594_v46 = vmul.f32 %v583_v39, %v573_v23 }
 0x21e   : >> { %v1626_v26 = vld [vmem:[%s796_s27 - $0x1] sm:$0xfe]  ;;  %v1631_v34 = vld [vmem:[%s2602_s2 + $0x7] ss:$0 sm:$0xff] }
 0x21f   : >> { %v805_v28 = vsel %vm728_vm14, %v798_v25, %v1626_v26  ;;  %v809_v29 = vld [vmem:[%s797_s28] ss:$0 sm:$0xff]  ;;  %v1629_v30 = vld [vmem:[%s797_s28 + $0x1] sm:$0x7f] }
 0x220   : >> { %v822_v31 = vld [vmem:[%s2602_s2] ss:$0 sm:$0xff]  ;;  %808 = vst [vmem:[%s796_s27] sm:$0xff] %v805_v28  ;;  %v817_v32 = vsel %vm740_vm15, %v1627_v27, %v1629_v30  ;;  %v1633_v37 = vld [vmem:[%s2604_s10 + $0x1] sm:$0x7f] }
 0x221   : >> { %v1630_v33 = vld [vmem:[%s2602_s2 - $0x1] sm:$0xfe]  ;;  %1628 = vst [vmem:[%s796_s27 + $0x1] sm:$0x1] %v809_v29  ;;  %819 = vst [vmem:[%s797_s28] sm:$0xff] %v817_v32  ;;  %v841_v40 = vsel %vm740_vm15, %v1631_v34, %v1633_v37  ;;  %s744_s27 = smov [#allocation13]  ;;  %s721_s28 = smov [#allocation14] }
 0x222   : >> { %v833_v35 = vld [vmem:[%s2604_s10] ss:$0 sm:$0xff]  ;;  %v829_v36 = vsel %vm728_vm14, %v822_v31, %v1630_v33 }
 0x223   : >> { %v582_v38 = vld [vmem:[%s2608_s11] sm:$0xff]  ;;  %832 = vst [vmem:[%s2602_s2] sm:$0xff] %v829_v36  ;;  %843 = vst [vmem:[%s2604_s10] sm:$0xff] %v841_v40  ;;  %s328_s10 = smov (%p401_p5), [#allocation13] }
 0x224   : >> { %v590_v41 = vmul.f32 %v582_v38, %v573_v23  ;;  %v593_v43 = vmul.f32 %v582_v38, %v575_v24  ;;  %v580_v44 = vld [vmem:[%s2612_s3] sm:$0xff]  ;;  %1632 = vst [vmem:[%s2602_s2 + $0x1] sm:$0x1] %v833_v35  ;;  %s309_s2 = smov (%p401_p5), [#allocation12] }
 0x225   : >> { %v581_v45 = vld [vmem:[%s2614_s13] sm:$0xff]  ;;  %v584_v47 = vmul.f32 %v580_v44, %v573_v23  ;;  %v587_v49 = vmul.f32 %v580_v44, %v575_v24 }
 0x226   : >> { %v585_v48 = vmul.f32 %v581_v45, %v575_v24  ;;  %v592_v50 = vsub.f32 %v590_v41, %v591_v42  ;;  %v588_v51 = vmul.f32 %v581_v45, %v573_v23  ;;  %v595_v52 = vadd.f32 %v594_v46, %v593_v43 }
 0x228   : >> { %v586_v53 = vsub.f32 %v584_v47, %v585_v48  ;;  %598 = vst [vmem:[%s2608_s11] sm:$0xff] %v592_v50  ;;  %v589_v54 = vadd.f32 %v588_v51, %v587_v49  ;;  %599 = vst [vmem:[%s2610_s12] sm:$0xff] %v595_v52  ;;  %s345_s11 = smov (%p401_p5), [#allocation14]  ;;  %s362_s12 = smov (%p401_p5), [#allocation15] }
 0x22a   : >> { %596 = vst [vmem:[%s2612_s3] sm:$0xff] %v586_v53  ;;  %597 = vst [vmem:[%s2614_s13] sm:$0xff] %v589_v54 }
 0x22f   : >> { %v635_v57 = vld [vmem:[%s628_s16] sm:$0xff] }
 0x230   : >> { %v639_v58 = vsel %vm638_vm0, 0.0, %v635_v57  ;;  %v650_v60 = vld [vmem:[%s641_s18] sm:$0xff] }
 0x231   : >> { %v609_v59 = vld [vmem:[%s600_s17] sm:$0xff]  ;;  %640 = vst [vmem:[%s628_s16] sm:$0xff] %v639_v58  ;;  %v654_v63 = vsel %vm653_vm3, %v649_v56, %v650_v60 }
 0x232   : >> { %v613_v61 = vsel %vm612_vm1, %v608_v55, %v609_v59  ;;  %v622_v62 = vld [vmem:[%s615_s19] sm:$0xff]  ;;  %655 = vst [vmem:[%s641_s18] sm:$0xff] %v654_v63 }
 0x233   : >> { %614 = vst [vmem:[%s600_s17] sm:$0xff] %v613_v61  ;;  %v626_v0 = vsel %vm625_vm4, 0.0, %v622_v62 }
 0x234   : >> { %627 = vst [vmem:[%s615_s19] sm:$0xff] %v626_v0 }
 0x238   : >> { %v694_v1 = vld [vmem:[%s2648_s20] sm:$0xff] }
 0x239   : >> { %695 = vrot.lane.b32.xlu0 %v694_v1, %s2448_s23  ;;  %v690_v4 = vld [vmem:[%s2651_s1] sm:$0xff] }
 0x23a   : >> { %v662_v2 = vld [vmem:[%s656_s22] sm:$0xff] }
 0x23b   : >> { %663 = vrot.lane.b32.xlu1 %v662_v2, %s2448_s23  ;;  %v658_v3 = vld [vmem:[%s657_s24] sm:$0xff] }
 0x23f   : >> { %659 = vrot.lane.b32.xlu1 %v658_v3, %s2448_s23 }
 0x243   : >> { %680 = vrot.lane.b32.xlu1 %v658_v3, %s2449_s25 }
 0x247   : >> { %691 = vrot.lane.b32.xlu1 %v690_v4, %s2448_s23 }
 0x24b   : >> { %712 = vrot.lane.b32.xlu1 %v690_v4, %s2449_s25 }
 0x2ab   : >> { %v696_v13 = vpop.permute.xlu0 %695 }
 0x2ac   : >> { %v700_v15 = vsel %vm667_vm5, %v694_v1, %v696_v13 }
 0x2ad   : >> { %v664_v5 = vpop.permute.xlu1 %663 }
 0x2ae   : >> { %v668_v6 = vsel %vm667_vm5, %v662_v2, %v664_v5 }
 0x2b1   : >> { %v660_v7 = vpop.permute.xlu1 %659 }
 0x2b2   : >> { %v672_v8 = vsel %vm671_vm6, %v660_v7, %v668_v6 }
 0x2b3   : >> { %v678_v9 = vsel %vm1405_vm2, %v672_v8, 0.0 }
 0x2b4   : >> { %686 = vst [vmem:[%s656_s22] sm:$0xff] %v678_v9 }
 0x2b5   : >> { %v681_v12 = vpop.permute.xlu1 %680 }
 0x2b6   : >> { %v685_v14 = vsel %vm684_vm7, %v662_v2, %v681_v12 }
 0x2b7   : >> { %687 = vst [vmem:[%s657_s24] sm:$0xff] %v685_v14 }
 0x2b9   : >> { %v692_v16 = vpop.permute.xlu1 %691 }
 0x2ba   : >> { %v704_v17 = vsel %vm671_vm6, %v692_v16, %v700_v15 }
 0x2bb   : >> { %v722_v18 = vld [vmem:[%s720_s26] ss:$0 sm:$0xff]  ;;  %v1619_v20 = vld [vmem:[%s720_s26 + $0x7] ss:$0 sm:$0xff]  ;;  %v710_v22 = vsel %vm1405_vm2, %v704_v17, 0.0 }
 0x2bc   : >> { %v1618_v19 = vld [vmem:[%s720_s26 - $0x1] sm:$0xfe]  ;;  %718 = vst [vmem:[%s2648_s20] sm:$0xff] %v710_v22 }
 0x2bd   : >> { %v729_v21 = vsel %vm728_vm14, %v722_v18, %v1618_v19  ;;  %v713_v23 = vpop.permute.xlu1 %712 }
 0x2be   : >> { %732 = vst [vmem:[%s720_s26] sm:$0xff] %v729_v21  ;;  %v746_v24 = vld [vmem:[%s744_s27] ss:$0 sm:$0xff]  ;;  %v1623_v26 = vld [vmem:[%s744_s27 + $0x7] ss:$0 sm:$0xff]  ;;  %v717_v27 = vsel %vm684_vm7, %v694_v1, %v713_v23 }
 0x2bf   : >> { %v1622_v25 = vld [vmem:[%s744_s27 - $0x1] sm:$0xfe]  ;;  %719 = vst [vmem:[%s2651_s1] sm:$0xff] %v717_v27 }
 0x2c0   : >> { %v753_v28 = vsel %vm728_vm14, %v746_v24, %v1622_v25 }
 0x2c1   : >> { %756 = vst [vmem:[%s744_s27] sm:$0xff] %v753_v28 }
 0x2c3   : >> { %v733_v29 = vld [vmem:[%s721_s28] ss:$0 sm:$0xff]  ;;  %v1621_v30 = vld [vmem:[%s721_s28 + $0x1] sm:$0x7f] }
 0x2c4   : >> { %1620 = vst [vmem:[%s720_s26 + $0x1] sm:$0x1] %v733_v29  ;;  %v741_v31 = vsel %vm740_vm15, %v1619_v20, %v1621_v30  ;;  %403 = sbr.rel (!%p401_p5) target bundleno = 276 (0x114), region = 435 }
 0x2c5   : >> { %743 = vst [vmem:[%s721_s28] sm:$0xff] %v741_v31 }
 0x2c6   : >> { %v757_v32 = vld [vmem:[%s745_s29] ss:$0 sm:$0xff]  ;;  %v1625_v33 = vld [vmem:[%s745_s29 + $0x1] sm:$0x7f] }
 0x2c7   : >> { %1624 = vst [vmem:[%s744_s27 + $0x1] sm:$0x1] %v757_v32  ;;  %v765_v34 = vsel %vm740_vm15, %v1623_v26, %v1625_v33 }
 0x2c8   : >> { %767 = vst [vmem:[%s745_s29] sm:$0xff] %v765_v34 }
 0x2cb   : > { %v315_v35 = vld [vmem:[%s309_s2] sm:$0xff] }
 0x2cc   : > { %v316_v37 = vsel %vm1405_vm2, %v315_v35, 0.0  ;;  %v351_v39 = vld [vmem:[%s345_s11] sm:$0xff] }
 0x2cd   : > { %v317_v41 = vmul.f32 %v316_v37, %v316_v37  ;;  %v352_v43 = vsel %vm1405_vm2, %v351_v39, 0.0 }
 0x2ce   : > { %v334_v36 = vld [vmem:[%s328_s10] sm:$0xff]  ;;  %v353_v45 = vmul.f32 %v352_v43, %v352_v43 }
 0x2cf   : > { %v335_v38 = vsel %vm1405_vm2, %v334_v36, 0.0  ;;  %v368_v40 = vld [vmem:[%s362_s12] sm:$0xff]  ;;  %v321_v48 = vsel %vm320_vm8, 0.0, %v317_v41 }
 0x2d0   : > { %v336_v42 = vmul.f32 %v335_v38, %v335_v38  ;;  %v369_v44 = vsel %vm1405_vm2, %v368_v40, 0.0 }
 0x2d1   : > { %v370_v47 = vmul.f32 %v369_v44, %v369_v44 }
 0x2d2   : > { %v338_v46 = vadd.f32 %v336_v42, %v317_v41  ;;  %v337_v49 = vadd.f32 %v336_v42, %v321_v48 }
 0x2d3   : > { %v374_v52 = vsel %vm373_vm9, 0.0, %v370_v47 }
 0x2d4   : > { %v355_v50 = vadd.f32 %v353_v45, %v338_v46  ;;  %v354_v51 = vadd.f32 %v353_v45, %v337_v49 }
 0x2d6   : > { %v376_v53 = vadd.f32 %v370_v47, %v355_v50  ;;  %v375_v54 = vadd.f32 %v374_v52, %v354_v51 }
 0x2d8   : > { %377 = vadd.xlane.f32.xlu0 %v376_v53 }
 0x2dc   : > { %385 = vadd.xlane.f32.xlu0 %v375_v54 }
 0x365   : > { %v378_v55 = vpop.xlane.xlu0 %377 }
 0x366   : > { %v379_v56 = vrot.slane %v378_v55, 4 }
 0x368   : > { %v380_v57 = vadd.f32 %v379_v56, %v378_v55 }
 0x369   : > { %v386_v58 = vpop.xlane.xlu0 %385 }
 0x36a   : > { %v381_v59 = vrot.slane %v380_v57, 2  ;;  %v387_v60 = vrot.slane %v386_v58, 4 }
 0x36c   : > { %v388_v61 = vadd.f32 %v387_v60, %v386_v58  ;;  %v382_v62 = vadd.f32 %v381_v59, %v380_v57 }
 0x36e   : > { %v389_v63 = vrot.slane %v388_v61, 2  ;;  %v383_v1 = vrot.slane %v382_v62, 1 }
 0x370   : > { %v390_v0 = vadd.f32 %v389_v63, %v388_v61  ;;  %v384_v4 = vadd.f32 %v383_v1, %v382_v62 }
 0x372   : > { %v391_v2 = vrot.slane %v390_v0, 1 }
 0x374   : > { %v392_v3 = vadd.f32 %v391_v2, %v390_v0 }
 0x376   : > { %1660 = vpush %v392_v3 }
 0x377   : > { %1662 = vpush %v384_v4 }
 0x3a7   : > { %s1661_s21 = spop %1660 }
 0x3a8   : > { %s1663_s3 = spop %1662 }
 0x3a9   : > { %s395_s13 = smul.f32 1e-10, %s1663_s3 }
 0x3ab   : > { %p396_p7 = scmp.le.f32.partialorder %s1661_s21, %s395_s13 }
 0x3ad   : > { %p398_p8 = por %p397_p6, %p396_p7 }
 0x3af   :  { %846 = sbr.rel (!%p398_p8) target bundleno = 275 (0x113), region = 446 }
 0x3b6 PF:  { %s847_s14 = smov [#allocation12]  ;;  %v851_v10 = vmov %v2524_v10  ;;  %v854_v11 = vmov %v2526_v11  ;;  %s867_s15 = smov [#allocation15] }
 0x3b7   :  { %v871_v10 = vmov %v2524_v10  ;;  %v874_v11 = vmov %v2526_v11  ;;  %v855_v5 = vld [vmem:[%s847_s14] sm:$0xff]  ;;  %vm858_vm10 = vcmp.eq.s32.totalorder %v854_v11, %v851_v10  ;;  %s848_s0 = smov [#allocation4]  ;;  %s868_s16 = smov [#allocation6] }
 0x3b8   :  { %vm878_vm11 = vcmp.eq.s32.totalorder %v874_v11, %v871_v10  ;;  %v859_v6 = vsel %vm858_vm10, %v855_v5, 0.0  ;;  %v875_v7 = vld [vmem:[%s867_s15] sm:$0xff]  ;;  %s2415_s24 = smov %s2730_s6   ;;  %s2419_s25 = smov [#allocation8]  }
 0x3b9   :  { %v860_v8 = vrot.slane %v859_v6, 4  ;;  %v879_v9 = vsel %vm878_vm11, %v875_v7, 0.0 }
 0x3ba   :  { %v880_v12 = vrot.slane %v879_v9, 4 }
 0x3bb   :  { %v861_v13 = vadd.f32 %v860_v8, %v859_v6 }
 0x3bc   :  { %v881_v14 = vadd.f32 %v880_v12, %v879_v9 }
 0x3bd   :  { %v862_v15 = vrot.slane %v861_v13, 2 }
 0x3be   :  { %v882_v16 = vrot.slane %v881_v14, 2 }
 0x3bf   :  { %v863_v17 = vadd.f32 %v862_v15, %v861_v13 }
 0x3c0   :  { %v883_v18 = vadd.f32 %v882_v16, %v881_v14 }
 0x3c1   :  { %v864_v19 = vrot.slane %v863_v17, 1 }
 0x3c2   :  { %v884_v20 = vrot.slane %v883_v18, 1 }
 0x3c3   :  { %v865_v21 = vadd.f32 %v864_v19, %v863_v17 }
 0x3c4   :  { %v885_v22 = vadd.f32 %v884_v20, %v883_v18 }
 0x3c5   :  { %866 = vst [vmem:[%s848_s0] sm:$0x1] %v865_v21 }
 0x3c6   :  { %886 = vst [vmem:[%s868_s16] sm:$0x1] %v885_v22 }
 0x3cc   :  { %v890_v10 = vld [vmem:[#allocation4] sm:$0x1] }
 0x3cd   :  { %892 = vst [vmem:[#allocation5] sm:$0x1] %v890_v10  ;;  %v896_v11 = vld [vmem:[#allocation6] sm:$0x1] }
 0x3ce   :  { %898 = vst [vmem:[#allocation7] sm:$0x1] %v896_v11 }
 0x3d4   :  { %v961_v23 = vld [vmem:[#allocation5] sm:$0x1] }
 0x3d5   :  { %962 = vst [vmem:[%s2728_s4] sm:$0x1] %v961_v23  ;;  %v1025_v24 = vld [vmem:[#allocation7] sm:$0x1] }
 0x3d6   :  { %1026 = vst [vmem:[%s2729_s5] sm:$0x1] %v1025_v24 }
 0x3d7 LB: > { %v1074_v25 = vld [vmem:[%s2421_s25] sm:$0xff]  ;;  %s1076_s25 = scalar_lea.vmem %s2421_s25, 8   ;;  %s2421_s25 = sphi %s2419_s25, %s1076_s25   ;;  %s2417_s24 = sphi %s2415_s24, %s1077_s24  }
 0x3d8   : > { %1075 = vst [vmem:[%s2417_s24] sm:$0xff] %v1074_v25  ;;  %s1077_s24 = scalar_lea.vmem %s2417_s24, 8   ;;  %p1071_p9 = scmp.gt.s32.totalorder %s1076_s25, [#allocation8] }
 0x3d9   :  { %s2423_s5 = smov (%p1071_p9), %s2731_s7   ;;  %s2427_s26 = smov (%p1071_p9), [#allocation9]  }
 0x3da   :  { %1073 = sbr.rel (!%p1071_p9) target bundleno = 983 (0x3d7), region = 512 }
 0x3e1 LB: > { %v1136_v26 = vld [vmem:[%s2429_s26] sm:$0xff]  ;;  %s1138_s26 = scalar_lea.vmem %s2429_s26, 8   ;;  %s2429_s26 = sphi %s2427_s26, %s1138_s26   ;;  %s2425_s5 = sphi %s2423_s5, %s1139_s5  }
 0x3e2   : > { %1137 = vst [vmem:[%s2425_s5] sm:$0xff] %v1136_v26  ;;  %s1139_s5 = scalar_lea.vmem %s2425_s5, 8   ;;  %p1133_p10 = scmp.gt.s32.totalorder %s1138_s26, [#allocation9] }
 0x3e3   :  { %s2431_s28 = smov (%p1133_p10), %s2732_s8   ;;  %s2435_s29 = smov (%p1133_p10), [#allocation10]  }
 0x3e4   :  { %1135 = sbr.rel (!%p1133_p10) target bundleno = 993 (0x3e1), region = 534 }
 0x3eb LB: > { %v1198_v27 = vld [vmem:[%s2437_s29] sm:$0xff]  ;;  %s1200_s29 = scalar_lea.vmem %s2437_s29, 8   ;;  %s2437_s29 = sphi %s2435_s29, %s1200_s29   ;;  %s2433_s28 = sphi %s2431_s28, %s1201_s28  }
 0x3ec   : > { %1199 = vst [vmem:[%s2433_s28] sm:$0xff] %v1198_v27  ;;  %s1201_s28 = scalar_lea.vmem %s2433_s28, 8   ;;  %p1195_p11 = scmp.gt.s32.totalorder %s1200_s29, [#allocation10] }
 0x3ed   :  { %s2439_s2 = smov (%p1195_p11), %s2733_s9   ;;  %s2443_s10 = smov (%p1195_p11), [#allocation11]  }
 0x3ee   :  { %1197 = sbr.rel (!%p1195_p11) target bundleno = 1003 (0x3eb), region = 556 }
 0x3f5 LB: > { %v1260_v28 = vld [vmem:[%s2445_s10] sm:$0xff]  ;;  %s1262_s10 = scalar_lea.vmem %s2445_s10, 8   ;;  %s2445_s10 = sphi %s2443_s10, %s1262_s10   ;;  %s2441_s2 = sphi %s2439_s2, %s1263_s2  }
 0x3f6   : > { %1261 = vst [vmem:[%s2441_s2] sm:$0xff] %v1260_v28  ;;  %s1263_s2 = scalar_lea.vmem %s2441_s2, 8   ;;  %p1257_p12 = scmp.gt.s32.totalorder %s1262_s10, [#allocation11] }
 0x3f8   :  { %1259 = sbr.rel (!%p1257_p12) target bundleno = 1013 (0x3f5), region = 578 }

// kernel: custom-call.5
= control target key start
LH: loop header
LB: loop body
LE: loop exit
PB: predicated region body
PF: predicated region fallthrough
CT: control target
= control target key end

     0   :  { %s1662_s30 = smov 0   ;;  %s1664_s10 = smov 0   ;;  %s1971_s0 = inlined_call_operand.vmem [shape: f32[8,8,8], index: 0, kind: input, shape index: {}]   ;;  %s1972_s1 = inlined_call_operand.vmem [shape: f32[8,8,8], index: 1, kind: input, shape index: {}]   ;;  %s1973_s2 = inlined_call_operand.vmem [shape: f32[8,8,8], index: 2, kind: input, shape index: {}]   ;;  %s1974_s3 = inlined_call_operand.vmem [shape: f32[8,8,8], index: 3, kind: input, shape index: {}]   ;;  %s1975_s4 = inlined_call_operand.vmem [shape: f32[8,8], index: 4, kind: output, shape index: {0}]   ;;  %s1976_s5 = inlined_call_operand.vmem [shape: f32[8,8], index: 5, kind: output, shape index: {1}]   ;;  %s1977_s6 = inlined_call_operand.vmem [shape: f32[8,8,8], index: 6, kind: output, shape index: {2}]   ;;  %s1978_s7 = inlined_call_operand.vmem [shape: f32[8,8,8], index: 7, kind: output, shape index: {3}]   ;;  %s1979_s8 = inlined_call_operand.vmem [shape: f32[8,8,8], index: 8, kind: output, shape index: {4}]   ;;  %s1980_s9 = inlined_call_operand.vmem [shape: f32[8,8,8], index: 9, kind: output, shape index: {5}]  }
   0x1   :  { %s1666_s11 = smov 0  }
   0x2 LB: > { %s1678_s12 = sadd.s32 4294967295, %s1599_s11   ;;  %s1681_s13 = sadd.s32 1, %s1599_s11   ;;  %s1599_s11 = sphi %s1666_s11, %s1989_s11   ;;  %s1595_s10 = sphi %s1664_s10, %s1988_s10   ;;  %s1591_s30 = sphi %s1662_s30, %s1987_s30  }
   0x3   : > { %s20_s14 = sshrl.u32 %s1599_s11, 3  ;;  %s21_s15 = sshrl.u32 %s1681_s13, 3 }
   0x4   : > { %s22_s16 = ssub.s32 %s20_s14, %s21_s15  ;;  %s25_s17 = sadd.s32 1, %s1595_s10 }
   0x5   : > { %p23_p0 = scmp.eq.s32.totalorder %s22_s16, 0  ;;  %p35_p1 = scmp.ne.s32.totalorder %s1595_s10, %s1591_s30 }
   0x6   : > { %p36_p2 = scmp.eq.s32.totalorder %s1678_s12, 7  ;;  %p1460_p4 = scmp.ge.s32.totalorder %s1599_s11, 8 }
   0x7   : > { %s1690_s18 = scalar_select %p23_p0, %s1595_s10, %s25_s17  }
   0x8   : > { %p1692_p3 = por %p36_p2, %p35_p1  ;;  %86 = sbr.rel (%p1460_p4) target bundleno = 17 (0x11), region = 16 }
   0x9   : > { %1981 = sst [smem:[#allocation23_spill]] %s1690_s18  ;;  %s88_s20 = sand.u32 (!%p1460_p4), 1, %s1599_s11  }
   0xa   : > { %s1462_s21 = sshll.u32 (!%p1460_p4), %s1599_s11, 3  ;;  %s1461_s22 = sshll.u32 (!%p1460_p4), %s88_s20, 3 }
   0xb   : > { %s92_s25 = scalar_lea.vmem (!%p1460_p4), %s1971_s0, %s1462_s21  ;;  %s90_s26 = scalar_lea.vmem (!%p1460_p4), [#allocation0], %s1461_s22 }
   0xc   : > { %v120_v0 = vld [vmem:[%s92_s25] sm:$0xff] (!%p1460_p4)  ;;  %s130_s29 = scalar_lea.vmem (!%p1460_p4), %s1972_s1, %s1462_s21  ;;  %s168_s16 = scalar_lea.vmem (!%p1460_p4), %s1973_s2, %s1462_s21 }
   0xd   : > { %121 = vst [vmem:[%s90_s26] sm:$0xff] (!%p1460_p4), %v120_v0  ;;  %v158_v1 = vld [vmem:[%s130_s29] sm:$0xff] (!%p1460_p4)  ;;  %s128_s17 = scalar_lea.vmem (!%p1460_p4), [#allocation1], %s1461_s22  ;;  %s206_s23 = scalar_lea.vmem (!%p1460_p4), %s1974_s3, %s1462_s21 }
   0xe   : > { %159 = vst [vmem:[%s128_s17] sm:$0xff] (!%p1460_p4), %v158_v1  ;;  %v196_v2 = vld [vmem:[%s168_s16] sm:$0xff] (!%p1460_p4)  ;;  %s166_s24 = scalar_lea.vmem (!%p1460_p4), [#allocation2], %s1461_s22  ;;  %s204_s25 = scalar_lea.vmem (!%p1460_p4), [#allocation3], %s1461_s22 }
   0xf   : > { %197 = vst [vmem:[%s166_s24] sm:$0xff] %v196_v2  ;;  %v234_v3 = vld [vmem:[%s206_s23] sm:$0xff] }
  0x10   : > { %235 = vst [vmem:[%s204_s25] sm:$0xff] %v234_v3 }
  0x11 PF: > { %p1469_p5 = scmp.ge.s32.totalorder %s1599_s11, 1  ;;  %p240_p6 = scmp.lt.s32.totalorder %s1599_s11, 9 }
  0x13   : > { %p241_p7 = pnand %p1469_p5, %p240_p6 }
  0x15   : > { %244 = sbr.rel (%p241_p7) target bundleno = 984 (0x3d8), region = 156 }
  0x1c   : > { %s247_s26 = sand.u32 1, %s1678_s12   ;;  %s281_s27 = sand.u32 1, %s1591_s30   ;;  %v325_v4 = vlaneseq  ;;  %v1609_v11 = vmov 0.0  }
  0x1d   : > { %s1470_s28 = sshll.u32 %s247_s26, 3  ;;  %s1715_s18 = sshll.u32 %s281_s27, 3 }
  0x1e   : > { %v1717_v5 = vand.u32 127, %v325_v4  ;;  %v1719_v6 = vshrl.u32 %v325_v4, 7  ;;  %s249_s21 = scalar_lea.vmem [#allocation0], %s1470_s28  ;;  %s253_s22 = scalar_lea.vmem [#allocation1], %s1470_s28 }
  0x1f   : > { %v309_v7 = vld [vmem:[%s249_s21] sm:$0xff]  ;;  %v312_v8 = vld [vmem:[%s253_s22] sm:$0xff]  ;;  %s257_s29 = scalar_lea.vmem [#allocation2], %s1470_s28  ;;  %s261_s11 = scalar_lea.vmem [#allocation3], %s1470_s28 }
  0x20   : > { %v315_v9 = vld [vmem:[%s257_s29] sm:$0xff]  ;;  %v318_v10 = vld [vmem:[%s261_s11] sm:$0xff]  ;;  %s1721_s14 = scalar_lea.vmem [#allocation6], %s1470_s28  ;;  %s1724_s30 = scalar_lea.vmem [#allocation7], %s1470_s28  ;;  %v327_v5 = vmov %v1717_v5  ;;  %v330_v6 = vmov %v1719_v6  ;;  %vm1349_vm2 = vcmp.lt.s32.totalorder %v1717_v5, 8 }
  0x21   : > { %320 = vst [vmem:[%s1721_s14] sm:$0xff] %v1609_v11  ;;  %321 = vst [vmem:[%s1724_s30] sm:$0xff] %v1609_v11  ;;  %s308_s15 = smov [#allocation10]  ;;  %s311_s16 = smov [#allocation11]  ;;  %v340_v5 = vmov %v1717_v5  ;;  %v343_v6 = vmov %v1719_v6  ;;  %vm334_vm0 = vcmp.eq.s32.totalorder %v330_v6, %v327_v5 }
  0x22   : > { %s1727_s17 = scalar_lea.vmem [#allocation8], %s1470_s28  ;;  %s1730_s20 = scalar_lea.vmem [#allocation9], %s1470_s28  ;;  %310 = vst [vmem:[%s308_s15] sm:$0xff] %v309_v7  ;;  %313 = vst [vmem:[%s311_s16] sm:$0xff] %v312_v8  ;;  %vm347_vm1 = vcmp.eq.s32.totalorder %v343_v6, %v340_v5  ;;  %v1341_v5 = vmov %v1717_v5  ;;  %v1344_v6 = vmov %v1719_v6 }
  0x23   : > { %322 = vst [vmem:[%s1727_s17] sm:$0xff] %v1609_v11  ;;  %323 = vst [vmem:[%s1730_s20] sm:$0xff] %v1609_v11  ;;  %s314_s23 = smov [#allocation12]  ;;  %s317_s24 = smov [#allocation13]  ;;  %vm1354_vm3 = vcmp.eq.s32.totalorder %v1344_v6, %v1341_v5  ;;  %v1392_v5 = vmov %v1717_v5  ;;  %v1361_v6 = vmov %v1719_v6 }
  0x24   : > { %316 = vst [vmem:[%s314_s23] sm:$0xff] %v315_v9  ;;  %319 = vst [vmem:[%s317_s24] sm:$0xff] %v318_v10  ;;  %s324_s14 = smov %s1721_s14  ;;  %s337_s20 = smov %s1730_s20  ;;  %v1358_v5 = vmov %v1717_v5  ;;  %v1395_v6 = vmov %v1719_v6 }
  0x25   : > { %s283_s25 = scalar_lea.vmem [#allocation4], %s1715_s18  ;;  %s1345_s27 = smov [#allocation10]  ;;  %v1375_v5 = vmov %v1717_v5  ;;  %v1378_v6 = vmov %v1719_v6  ;;  %vm1405_vm4 = vcmp.eq.s32.totalorder %v1395_v6, %v1392_v5 }
  0x26   : > { %s1362_s28 = smov [#allocation11]  ;;  %s1379_s21 = smov [#allocation12] }
  0x27   : > { %s1396_s22 = smov [#allocation13] }
  0x28   : > { %v331_v12 = vld [vmem:[%s324_s14] sm:$0xff] }
  0x29   : > { %v335_v13 = vsel %vm334_vm0, 1.0, %v331_v12  ;;  %v1351_v16 = vld [vmem:[%s1345_s27] sm:$0xff] }
  0x2a   : > { %v344_v14 = vld [vmem:[%s337_s20] sm:$0xff]  ;;  %336 = vst [vmem:[%s324_s14] sm:$0xff] %v335_v13  ;;  %v1352_v18 = vsel %vm1349_vm2, %v1351_v16, 0.0 }
  0x2b   : > { %v348_v15 = vsel %vm347_vm1, 1.0, %v344_v14  ;;  %v1368_v17 = vld [vmem:[%s1362_s28] sm:$0xff]  ;;  %v1353_v22 = vmul.f32 %v1352_v18, %v1352_v18 }
  0x2c   : > { %349 = vst [vmem:[%s337_s20] sm:$0xff] %v348_v15  ;;  %v1369_v19 = vsel %vm1349_vm2, %v1368_v17, 0.0  ;;  %v1385_v20 = vld [vmem:[%s1379_s21] sm:$0xff] }
  0x2d   : > { %v1402_v21 = vld [vmem:[%s1396_s22] sm:$0xff]  ;;  %v1370_v23 = vmul.f32 %v1369_v19, %v1369_v19  ;;  %v1386_v24 = vsel %vm1349_vm2, %v1385_v20, 0.0  ;;  %v1355_v29 = vsel %vm1354_vm3, 0.0, %v1353_v22 }
  0x2e   : > { %v1403_v25 = vsel %vm1349_vm2, %v1402_v21, 0.0  ;;  %v1387_v26 = vmul.f32 %v1386_v24, %v1386_v24 }
  0x2f   : > { %v1372_v27 = vadd.f32 %v1370_v23, %v1353_v22  ;;  %v1404_v28 = vmul.f32 %v1403_v25, %v1403_v25  ;;  %v1371_v30 = vadd.f32 %v1370_v23, %v1355_v29 }
  0x31   : > { %v1389_v31 = vadd.f32 %v1387_v26, %v1372_v27  ;;  %v1388_v32 = vadd.f32 %v1387_v26, %v1371_v30  ;;  %v1406_v33 = vsel %vm1405_vm4, 0.0, %v1404_v28 }
  0x33   : > { %v1408_v34 = vadd.f32 %v1404_v28, %v1389_v31  ;;  %v1407_v35 = vadd.f32 %v1406_v33, %v1388_v32 }
  0x35   : > { %1409 = vadd.xlane.f32.xlu0 %v1408_v34 }
  0x39   : > { %1417 = vadd.xlane.f32.xlu0 %v1407_v35 }
  0xc2   : > { %v1410_v36 = vpop.xlane.xlu0 %1409 }
  0xc3   : > { %v1411_v37 = vrot.slane %v1410_v36, 4 }
  0xc5   : > { %v1412_v38 = vadd.f32 %v1411_v37, %v1410_v36 }
  0xc6   : > { %v1418_v39 = vpop.xlane.xlu0 %1417 }
  0xc7   : > { %v1413_v40 = vrot.slane %v1412_v38, 2  ;;  %v1419_v41 = vrot.slane %v1418_v39, 4 }
  0xc9   : > { %v1420_v42 = vadd.f32 %v1419_v41, %v1418_v39  ;;  %v1414_v43 = vadd.f32 %v1413_v40, %v1412_v38 }
  0xcb   : > { %v1421_v44 = vrot.slane %v1420_v42, 2  ;;  %v1415_v46 = vrot.slane %v1414_v43, 1 }
  0xcd   : > { %v1422_v45 = vadd.f32 %v1421_v44, %v1420_v42  ;;  %v1416_v49 = vadd.f32 %v1415_v46, %v1414_v43 }
  0xcf   : > { %v1423_v47 = vrot.slane %v1422_v45, 1 }
  0xd1   : > { %v1424_v48 = vadd.f32 %v1423_v47, %v1422_v45 }
  0xd3   : > { %1510 = vpush %v1424_v48 }
  0xd4   : > { %1512 = vpush %v1416_v49 }
 0x104   : > { %s1511_s29 = spop %1510 }
 0x105   : > { %s1513_s11 = spop %1512 }
 0x106   : > { %s1427_s15 = smul.f32 1e-10, %s1513_s11 }
 0x108   : > { %p1428_p8 = scmp.le.f32.partialorder %s1511_s29, %s1427_s15 }
 0x109   : > { %s1759_s16 = smov (!%p1428_p8), 0  }
 0x10a   : > { %1431 = sbr.rel (%p1428_p8) target bundleno = 948 (0x3b4), region = 507 }
 0x111 LB: >> { %s1764_s23 = smov 0   ;;  %s1603_s16 = sphi %s1759_s16, %s1983_s16  }
 0x112 LB: >>> { %s454_s24 = smov [#allocation10]  ;;  %v458_v5 = vmov %v1717_v5  ;;  %v461_v6 = vmov %v1719_v6  ;;  %s474_s27 = smov [#allocation11]  ;;  %vm777_vm14 = vcmp.eq.s32.totalorder %v1719_v6, 0  ;;  %vm789_vm15 = vcmp.eq.s32.totalorder %v1719_v6, 7  ;;  %s1607_s23 = sphi %s1764_s23, %s453_s23  }
 0x113   : >>> { %v478_v5 = vmov %v1717_v5  ;;  %v481_v6 = vmov %v1719_v6  ;;  %v462_v50 = vld [vmem:[%s454_s24] sm:$0xff]  ;;  %vm465_vm5 = vcmp.eq.s32.totalorder %v461_v6, %v458_v5  ;;  %s494_s28 = smov [#allocation13]  ;;  %s455_s21 = smov [#allocation14] }
 0x114   : >>> { %vm485_vm6 = vcmp.eq.s32.totalorder %v481_v6, %v478_v5  ;;  %v498_v5 = vmov %v1717_v5  ;;  %v501_v6 = vmov %v1719_v6  ;;  %v466_v51 = vsel %vm465_vm5, %v462_v50, 0.0  ;;  %v482_v52 = vld [vmem:[%s474_s27] sm:$0xff]  ;;  %s475_s22 = smov [#allocation15]  ;;  %s495_s29 = smov [#allocation16] }
 0x115   : >>> { %vm505_vm7 = vcmp.eq.s32.totalorder %v501_v6, %v498_v5  ;;  %v467_v53 = vrot.slane %v466_v51, 4  ;;  %v486_v54 = vsel %vm485_vm6, %v482_v52, 0.0  ;;  %v502_v55 = vld [vmem:[%s494_s28] sm:$0xff]  ;;  %s518_s11 = smov [#allocation15]  ;;  %s516_s15 = smov [#allocation14]  ;;  %v567_v5 = vmov %v1717_v5 }
 0x116   : >>> { %v487_v56 = vrot.slane %v486_v54, 4  ;;  %v506_v57 = vsel %vm505_vm7, %v502_v55, 0.0  ;;  %s520_s24 = smov [#allocation16]  ;;  %s555_s27 = smov [#allocation17]  ;;  %v570_v6 = vmov %v1719_v6  ;;  %v582_v5 = vmov %v1717_v5 }
 0x117   : >>> { %v468_v58 = vadd.f32 %v467_v53, %v466_v51  ;;  %v507_v59 = vrot.slane %v506_v57, 4  ;;  %s557_s28 = smov [#allocation18]  ;;  %v585_v6 = vmov %v1719_v6  ;;  %vm572_vm12 = vcmp.eq.s32.totalorder %v570_v6, %v567_v5  ;;  %s1786_s14 = smov %s1721_s14 }
 0x118   : >>> { %v488_v60 = vadd.f32 %v487_v56, %v486_v54  ;;  %vm587_vm13 = vcmp.eq.s32.totalorder %v585_v6, %v582_v5  ;;  %s1789_s30 = smov %s1724_s30  ;;  %s1792_s17 = smov %s1727_s17  ;;  %v825_v52 = vld [vmem:[%s1786_s14] sm:$0xff]  ;;  %v680_v5 = vmov %v1717_v5  ;;  %v683_v6 = vmov %v1719_v6 }
 0x119   : >>> { %v469_v61 = vrot.slane %v468_v58, 2  ;;  %v508_v62 = vadd.f32 %v507_v59, %v506_v57  ;;  %s1796_s20 = smov %s1730_s20  ;;  %v826_v53 = vld [vmem:[%s1789_s30] sm:$0xff]  ;;  %s819_s26 = smov [#allocation22]  ;;  %v653_v5 = vmov %v1717_v5  ;;  %v656_v6 = vmov %v1719_v6 }
 0x11a   : >>> { %v489_v63 = vrot.slane %v488_v60, 2  ;;  %v827_v56 = vld [vmem:[%s1792_s17] sm:$0xff]  ;;  %v694_v5 = vmov %v1717_v5  ;;  %v697_v6 = vmov %v1719_v6  ;;  %vm687_vm0 = vcmp.eq.s32.totalorder %v683_v6, %v680_v5  ;;  %s453_s23 = sadd.s32 1, %s1607_s23  }
 0x11b   : >>> { %v470_v0 = vadd.f32 %v469_v61, %v468_v58  ;;  %v509_v1 = vrot.slane %v508_v62, 2  ;;  %v828_v57 = vld [vmem:[%s1796_s20] sm:$0xff]  ;;  %v667_v5 = vmov %v1717_v5  ;;  %v670_v6 = vmov %v1719_v6  ;;  %p450_p9 = scmp.ge.s32.totalorder %s453_s23, 15  }
 0x11c   : >>> { %v490_v2 = vadd.f32 %v489_v63, %v488_v60  ;;  %vm661_vm1 = vcmp.eq.s32.totalorder %v656_v6, %v653_v5  ;;  %vm702_vm3 = vcmp.eq.s32.totalorder %v697_v6, %v694_v5  ;;  %vm674_vm4 = vcmp.eq.s32.totalorder %v670_v6, %v667_v5 }
 0x11d   : >>> { %v471_v3 = vrot.slane %v470_v0, 1  ;;  %v510_v4 = vadd.f32 %v509_v1, %v508_v62  ;;  %vm716_vm5 = vcmp.eq.s32.totalorder %v1717_v5, 0  ;;  %vm720_vm6 = vcmp.eq.s32.totalorder %v1717_v5, 1 }
 0x11e   : >>> { %v491_v7 = vrot.slane %v490_v2, 1  ;;  %vm733_vm7 = vcmp.eq.s32.totalorder %v1717_v5, 7  ;;  %v354_v5 = vmov (%p450_p9), %v1717_v5  ;;  %v357_v6 = vmov (%p450_p9), %v1719_v6 }
 0x11f   : >>> { %v472_v8 = vadd.f32 %v471_v3, %v470_v0  ;;  %v511_v9 = vrot.slane %v510_v4, 1  ;;  %v407_v5 = vmov (%p450_p9), %v1717_v5 }
 0x120   : >>> { %v492_v10 = vadd.f32 %v491_v7, %v490_v2 }
 0x121   : >>> { %473 = vst [vmem:[%s455_s21] sm:$0x1] %v472_v8  ;;  %v512_v11 = vadd.f32 %v511_v9, %v510_v4  ;;  %s514_s21 = smov [#allocation19] }
 0x122   : >>> { %493 = vst [vmem:[%s475_s22] sm:$0x1] %v492_v10  ;;  %s515_s22 = smov [#allocation20]  ;;  %s559_s21 = smov %s514_s21 }
 0x123   : >>> { %513 = vst [vmem:[%s495_s29] sm:$0x1] %v512_v11  ;;  %s561_s22 = smov %s515_s22  ;;  %s563_s29 = smov [#allocation19] }
 0x128   : >>> { %v517_v14 = vld [vmem:[%s516_s15] sm:$0xff]  ;;  %s576_s15 = smov [#allocation21] }
 0x129   : >>> { %v519_v12 = vld [vmem:[%s518_s11] sm:$0xff]  ;;  %v540_v27 = vand.u32 2147483647, %v517_v14  ;;  %s578_s11 = smov [#allocation20] }
 0x12a   : >>> { %v523_v13 = vmul.f32 2.0, %v519_v12  ;;  %v521_v15 = vld [vmem:[%s520_s24] sm:$0xff]  ;;  %v541_v32 = vand.u32 2147483647, %v519_v12  ;;  %s593_s24 = smov [#allocation21] }
 0x12b   : >>> { %v522_v16 = vsub.f32 %v521_v15, %v517_v14  ;;  %v542_v28 = vand.u32 2147483647, %v521_v15 }
 0x12c   : >>> { %1561 = vrcp.f32 %v523_v13 }
 0x12d   : >>> { %v543_v31 = vmin.f32 %v540_v27, %v542_v28 }
 0x12f   : >>> { %v544_v33 = vmul.f32 1.1920929e-08, %v543_v31 }
 0x131   : >>> { %vm545_vm11 = vcmp.le.f32.partialorder %v541_v32, %v544_v33 }
 0x136   : >>> { %v1562_v17 = vpop.eup %1561 }
 0x137   : >>> { %v525_v18 = vmul.f32 %v1562_v17, %v522_v16 }
 0x139   : >>> { %v527_v19 = vmul.f32 %v525_v18, %v525_v18  ;;  %vm526_vm10 = vcmp.ge.f32.partialorder %v525_v18, 0.0 }
 0x13b   : >>> { %v528_v20 = vadd.f32 1.0, %v527_v19 }
 0x13d   : >>> { %1563 = vrsqrt.f32 %v528_v20  ;;  %vm531_vm8 = vcmp.eq.f32.partialorder %v528_v20, inf  ;;  %v534_v22 = vand.u32 2147483648, %v528_v20  ;;  %vm533_vm9 = vcmp.eq.f32.partialorder %v528_v20, 0.0 }
 0x147   : >>> { %v1564_v21 = vpop.eup %1563 }
 0x148   : >>> { %v530_v23 = vmul.f32 %v1564_v21, %v528_v20 }
 0x14a   : >>> { %v532_v24 = vsel %vm531_vm8, %v528_v20, %v530_v23  ;;  %vm369_vm8 = vcmp.eq.s32.totalorder (%p450_p9), %v357_v6, %v354_v5  ;;  %v410_v6 = vmov (%p450_p9), %v1719_v6  ;;  %v373_v5 = vmov (%p450_p9), %v1717_v5 }
 0x14b   : >>> { %v535_v25 = vsel %vm533_vm9, %v534_v22, %v532_v24  ;;  %v376_v6 = vmov (%p450_p9), %v1719_v6  ;;  %v390_v5 = vmov (%p450_p9), %v1717_v5  ;;  %vm422_vm9 = vcmp.eq.s32.totalorder (%p450_p9), %v410_v6, %v407_v5 }
 0x14c   : >>> { %v536_v26 = vxor.u32 2147483648, %v535_v25  ;;  %v393_v6 = vmov (%p450_p9), %v1719_v6 }
 0x14e   : >>> { %v537_v29 = vsel %vm526_vm10, %v535_v25, %v536_v26 }
 0x14f   : >>> { %v538_v30 = vadd.f32 %v537_v29, %v525_v18 }
 0x151   : >>> { %1565 = vrcp.f32 %v538_v30 }
 0x15b   : >>> { %v1566_v34 = vpop.eup %1565 }
 0x15c   : >>> { %v546_v35 = vsel %vm545_vm11, 0.0, %v1566_v34 }
 0x15d   : >>> { %v547_v36 = vmul.f32 %v546_v35, %v546_v35  ;;  %v551_v37 = vmul.f32 %v546_v35, %v519_v12 }
 0x15f   : >>> { %v548_v38 = vadd.f32 1.0, %v547_v36  ;;  %v552_v39 = vsub.f32 %v517_v14, %v551_v37  ;;  %v554_v40 = vadd.f32 %v551_v37, %v521_v15 }
 0x161   : >>> { %1567 = vrsqrt.f32 %v548_v38  ;;  %556 = vst [vmem:[%s555_s27] sm:$0xff] %v552_v39  ;;  %558 = vst [vmem:[%s557_s28] sm:$0xff] %v554_v40  ;;  %s1779_s27 = smov [#allocation10]  ;;  %s591_s28 = smov [#allocation22] }
 0x162   : >>> { %v601_v49 = vld [vmem:[%s1779_s27] sm:$0xff] }
 0x16b   : >>> { %v1568_v41 = vpop.eup %1567 }
 0x16c   : >>> { %560 = vst [vmem:[%s559_s21] sm:$0xff] %v1568_v41  ;;  %v550_v42 = vmul.f32 %v1568_v41, %v546_v35  ;;  %s1781_s21 = smov [#allocation11] }
 0x16d   : >>> { %v602_v50 = vld [vmem:[%s1781_s21] sm:$0xff] }
 0x16e   : >>> { %562 = vst [vmem:[%s561_s22] sm:$0xff] %v550_v42  ;;  %s1783_s22 = smov [#allocation13] }
 0x16f   : >>> { %v604_v51 = vld [vmem:[%s1783_s22] sm:$0xff] }
 0x173   : >>> { %v564_v43 = vld [vmem:[%s563_s29] ss:$0 sm:$0xff]  ;;  %s817_s29 = smov [#allocation21] }
 0x174   : >>> { %v573_v44 = vsel %vm572_vm12, %v564_v43, 0.0 }
 0x175   : >>> { %574 = vadd.xlane.f32.xlu0 %v573_v44  ;;  %v579_v45 = vld [vmem:[%s578_s11] ss:$0 sm:$0xff]  ;;  %s1798_s11 = smov [#allocation12] }
 0x176   : >>> { %v588_v46 = vsel %vm587_vm13, %v579_v45, 0.0  ;;  %v603_v58 = vld [vmem:[%s1798_s11] sm:$0xff] }
 0x179   : >>> { %589 = vadd.xlane.f32.xlu0 %v588_v46 }
 0x202   : >>> { %v575_v47 = vpop.xlane.xlu0 %574 }
 0x203   : >>> { %577 = vst [vmem:[%s576_s15] sm:$0xff] %v575_v47  ;;  %s595_s15 = smov [#allocation22] }
 0x206   : >>> { %v590_v48 = vpop.xlane.xlu0 %589 }
 0x207   : >>> { %592 = vst [vmem:[%s591_s28] sm:$0xff] %v590_v48  ;;  %s1825_s28 = smov [#allocation12] }
 0x20a   : >>> { %v594_v54 = vld [vmem:[%s593_s24] sm:$0xff]  ;;  %s623_s24 = smov [#allocation20] }
 0x20b   : >>> { %v818_v55 = vld [vmem:[%s817_s29] sm:$0xff]  ;;  %v605_v59 = vmul.f32 %v601_v49, %v594_v54  ;;  %v608_v60 = vmul.f32 %v602_v50, %v594_v54  ;;  %v615_v61 = vmul.f32 %v604_v51, %v594_v54  ;;  %v612_v4 = vmul.f32 %v603_v58, %v594_v54  ;;  %s650_s29 = smov [#allocation17] }
 0x20c   : >>> { %v829_v62 = vmul.f32 %v825_v52, %v818_v55  ;;  %v832_v63 = vmul.f32 %v826_v53, %v818_v55  ;;  %v836_v0 = vmul.f32 %v827_v56, %v818_v55  ;;  %v839_v1 = vmul.f32 %v828_v57, %v818_v55  ;;  %v624_v24 = vld [vmem:[%s623_s24] ss:$0 sm:$0xff]  ;;  %s690_s24 = smov [#allocation13] }
 0x20d   : >>> { %v657_v55 = vld [vmem:[%s650_s29] ss:$0 sm:$0xff]  ;;  %s706_s29 = smov [#allocation11] }
 0x20e   : >>> { %v596_v2 = vld [vmem:[%s595_s15] sm:$0xff]  ;;  %s677_s15 = smov [#allocation12] }
 0x20f   : >>> { %v820_v3 = vld [vmem:[%s819_s26] sm:$0xff]  ;;  %v609_v7 = vmul.f32 %v604_v51, %v596_v2  ;;  %v611_v8 = vmul.f32 %v601_v49, %v596_v2  ;;  %v614_v9 = vmul.f32 %v602_v50, %v596_v2  ;;  %v606_v14 = vmul.f32 %v603_v58, %v596_v2  ;;  %s621_s26 = smov [#allocation19] }
 0x210   : >>> { %v830_v10 = vmul.f32 %v827_v56, %v820_v3  ;;  %v833_v11 = vmul.f32 %v828_v57, %v820_v3  ;;  %v835_v12 = vmul.f32 %v825_v52, %v820_v3  ;;  %v838_v13 = vmul.f32 %v826_v53, %v820_v3  ;;  %v622_v23 = vld [vmem:[%s621_s26] ss:$0 sm:$0xff]  ;;  %s649_s26 = smov [#allocation10] }
 0x211   : >>> { %v610_v15 = vsub.f32 %v608_v60, %v609_v7  ;;  %v616_v16 = vadd.f32 %v615_v61, %v614_v9  ;;  %v613_v18 = vadd.f32 %v612_v4, %v611_v8  ;;  %v607_v22 = vsub.f32 %v605_v59, %v606_v14 }
 0x212   : >>> { %v831_v17 = vsub.f32 %v829_v62, %v830_v10  ;;  %v834_v19 = vsub.f32 %v832_v63, %v833_v11  ;;  %v837_v20 = vadd.f32 %v836_v0, %v835_v12  ;;  %v840_v21 = vadd.f32 %v839_v1, %v838_v13 }
 0x213   : >>> { %618 = vst [vmem:[%s1781_s21] sm:$0xff] %v610_v15  ;;  %620 = vst [vmem:[%s1783_s22] sm:$0xff] %v616_v16  ;;  %s1827_s21 = smov [#allocation13]  ;;  %s1831_s22 = smov [#allocation11] }
 0x214   : >>> { %841 = vst [vmem:[%s1786_s14] sm:$0xff] %v831_v17  ;;  %619 = vst [vmem:[%s1798_s11] sm:$0xff] %v613_v18  ;;  %s845_s14 = smov %s1721_s14  ;;  %s691_s11 = smov [#allocation18] }
 0x215   : >>> { %842 = vst [vmem:[%s1789_s30] sm:$0xff] %v834_v19  ;;  %843 = vst [vmem:[%s1792_s17] sm:$0xff] %v837_v20  ;;  %s846_s17 = smov %s1727_s17  ;;  %s1818_s30 = smov %s1724_s30  ;;  %v698_v56 = vld [vmem:[%s691_s11] ss:$0 sm:$0xff] }
 0x216   : >>> { %844 = vst [vmem:[%s1796_s20] sm:$0xff] %v840_v21  ;;  %617 = vst [vmem:[%s1779_s27] sm:$0xff] %v607_v22  ;;  %s1821_s20 = smov %s1730_s20  ;;  %s1829_s27 = smov [#allocation10] }
 0x217   : >>> { %s1611_s11 = smov 127  }
 0x21a   : >>> { %v632_v39 = vld [vmem:[%s1827_s21] sm:$0xff] }
 0x21b   : >>> { %v847_v25 = vld [vmem:[%s845_s14] ss:$0 sm:$0xff]  ;;  %v1489_v27 = vld [vmem:[%s845_s14 + $0x7] ss:$0 sm:$0xff]  ;;  %v640_v42 = vmul.f32 %v632_v39, %v624_v24  ;;  %v643_v46 = vmul.f32 %v632_v39, %v622_v23 }
 0x21c   : >>> { %v1488_v26 = vld [vmem:[%s845_s14 - $0x1] sm:$0xfe]  ;;  %v1493_v34 = vld [vmem:[%s1818_s30 + $0x7] ss:$0 sm:$0xff] }
 0x21d   : >>> { %v854_v28 = vsel %vm777_vm14, %v847_v25, %v1488_v26  ;;  %v858_v29 = vld [vmem:[%s846_s17] ss:$0 sm:$0xff]  ;;  %v1491_v30 = vld [vmem:[%s846_s17 + $0x1] sm:$0x7f] }
 0x21e   : >>> { %v871_v31 = vld [vmem:[%s1818_s30] ss:$0 sm:$0xff]  ;;  %857 = vst [vmem:[%s845_s14] sm:$0xff] %v854_v28  ;;  %v866_v32 = vsel %vm789_vm15, %v1489_v27, %v1491_v30  ;;  %v1495_v37 = vld [vmem:[%s1821_s20 + $0x1] sm:$0x7f] }
 0x21f   : >>> { %v1492_v33 = vld [vmem:[%s1818_s30 - $0x1] sm:$0xfe]  ;;  %1490 = vst [vmem:[%s845_s14 + $0x1] sm:$0x1] %v858_v29  ;;  %868 = vst [vmem:[%s846_s17] sm:$0xff] %v866_v32  ;;  %v890_v40 = vsel %vm789_vm15, %v1493_v34, %v1495_v37 }
 0x220   : >>> { %v882_v35 = vld [vmem:[%s1821_s20] ss:$0 sm:$0xff]  ;;  %v878_v36 = vsel %vm777_vm14, %v871_v31, %v1492_v33 }
 0x221   : >>> { %v631_v38 = vld [vmem:[%s1825_s28] sm:$0xff]  ;;  %881 = vst [vmem:[%s1818_s30] sm:$0xff] %v878_v36  ;;  %892 = vst [vmem:[%s1821_s20] sm:$0xff] %v890_v40 }
 0x222   : >>> { %v639_v41 = vmul.f32 %v631_v38, %v622_v23  ;;  %v642_v43 = vmul.f32 %v631_v38, %v624_v24  ;;  %v629_v44 = vld [vmem:[%s1829_s27] sm:$0xff]  ;;  %1494 = vst [vmem:[%s1818_s30 + $0x1] sm:$0x1] %v882_v35 }
 0x223   : >>> { %v630_v45 = vld [vmem:[%s1831_s22] sm:$0xff]  ;;  %v633_v47 = vmul.f32 %v629_v44, %v622_v23  ;;  %v636_v49 = vmul.f32 %v629_v44, %v624_v24 }
 0x224   : >>> { %v634_v48 = vmul.f32 %v630_v45, %v624_v24  ;;  %v641_v50 = vsub.f32 %v639_v41, %v640_v42  ;;  %v637_v51 = vmul.f32 %v630_v45, %v622_v23  ;;  %v644_v52 = vadd.f32 %v643_v46, %v642_v43 }
 0x226   : >>> { %v635_v53 = vsub.f32 %v633_v47, %v634_v48  ;;  %647 = vst [vmem:[%s1825_s28] sm:$0xff] %v641_v50  ;;  %v638_v54 = vadd.f32 %v637_v51, %v636_v49  ;;  %648 = vst [vmem:[%s1827_s21] sm:$0xff] %v644_v52  ;;  %s664_s28 = smov [#allocation11]  ;;  %s1865_s21 = smov [#allocation12] }
 0x228   : >>> { %645 = vst [vmem:[%s1829_s27] sm:$0xff] %v635_v53  ;;  %646 = vst [vmem:[%s1831_s22] sm:$0xff] %v638_v54  ;;  %s705_s27 = smov [#allocation10]  ;;  %s1610_s22 = smov 1  }
 0x22d   : >>> { %v684_v57 = vld [vmem:[%s677_s15] sm:$0xff] }
 0x22e   : >>> { %v688_v58 = vsel %vm687_vm0, 0.0, %v684_v57  ;;  %v699_v60 = vld [vmem:[%s690_s24] sm:$0xff] }
 0x22f   : >>> { %v658_v59 = vld [vmem:[%s649_s26] sm:$0xff]  ;;  %689 = vst [vmem:[%s677_s15] sm:$0xff] %v688_v58  ;;  %v703_v63 = vsel %vm702_vm3, %v698_v56, %v699_v60  ;;  %s1868_s15 = smov [#allocation13] }
 0x230   : >>> { %v662_v61 = vsel %vm661_vm1, %v657_v55, %v658_v59  ;;  %v671_v62 = vld [vmem:[%s664_s28] sm:$0xff]  ;;  %704 = vst [vmem:[%s690_s24] sm:$0xff] %v703_v63  ;;  %s793_s24 = smov [#allocation11] }
 0x231   : >>> { %663 = vst [vmem:[%s649_s26] sm:$0xff] %v662_v61  ;;  %v675_v0 = vsel %vm674_vm4, 0.0, %v671_v62  ;;  %s769_s26 = smov [#allocation10] }
 0x232   : >>> { %676 = vst [vmem:[%s664_s28] sm:$0xff] %v675_v0  ;;  %s770_s28 = smov [#allocation12] }
 0x236   : >>> { %v743_v1 = vld [vmem:[%s1865_s21] sm:$0xff] }
 0x237   : >>> { %744 = vrot.lane.b32.xlu0 %v743_v1, %s1610_s22  ;;  %v739_v4 = vld [vmem:[%s1868_s15] sm:$0xff] }
 0x238   : >>> { %v711_v2 = vld [vmem:[%s705_s27] sm:$0xff] }
 0x239   : >>> { %712 = vrot.lane.b32.xlu1 %v711_v2, %s1610_s22  ;;  %v707_v3 = vld [vmem:[%s706_s29] sm:$0xff] }
 0x23d   : >>> { %708 = vrot.lane.b32.xlu1 %v707_v3, %s1610_s22 }
 0x241   : >>> { %729 = vrot.lane.b32.xlu1 %v707_v3, %s1611_s11 }
 0x245   : >>> { %740 = vrot.lane.b32.xlu1 %v739_v4, %s1610_s22  ;;  %s358_s22 = smov (%p450_p9), [#allocation10] }
 0x249   : >>> { %761 = vrot.lane.b32.xlu1 %v739_v4, %s1611_s11  ;;  %s394_s11 = smov (%p450_p9), [#allocation12] }
 0x2a9   : >>> { %v745_v13 = vpop.permute.xlu0 %744 }
 0x2aa   : >>> { %v749_v15 = vsel %vm716_vm5, %v743_v1, %v745_v13 }
 0x2ab   : >>> { %v713_v7 = vpop.permute.xlu1 %712 }
 0x2ac   : >>> { %v717_v8 = vsel %vm716_vm5, %v711_v2, %v713_v7 }
 0x2af   : >>> { %v709_v9 = vpop.permute.xlu1 %708 }
 0x2b0   : >>> { %v721_v10 = vsel %vm720_vm6, %v709_v9, %v717_v8 }
 0x2b1   : >>> { %v727_v11 = vsel %vm1349_vm2, %v721_v10, 0.0 }
 0x2b2   : >>> { %735 = vst [vmem:[%s705_s27] sm:$0xff] %v727_v11  ;;  %s794_s27 = smov [#allocation13] }
 0x2b3   : >>> { %v730_v12 = vpop.permute.xlu1 %729 }
 0x2b4   : >>> { %v734_v14 = vsel %vm733_vm7, %v711_v2, %v730_v12 }
 0x2b5   : >>> { %736 = vst [vmem:[%s706_s29] sm:$0xff] %v734_v14  ;;  %s377_s29 = smov (%p450_p9), [#allocation11] }
 0x2b7   : >>> { %v741_v16 = vpop.permute.xlu1 %740 }
 0x2b8   : >>> { %v753_v17 = vsel %vm720_vm6, %v741_v16, %v749_v15 }
 0x2b9   : >>> { %v771_v18 = vld [vmem:[%s769_s26] ss:$0 sm:$0xff]  ;;  %v1481_v20 = vld [vmem:[%s769_s26 + $0x7] ss:$0 sm:$0xff]  ;;  %v759_v22 = vsel %vm1349_vm2, %v753_v17, 0.0 }
 0x2ba   : >>> { %v1480_v19 = vld [vmem:[%s769_s26 - $0x1] sm:$0xfe]  ;;  %767 = vst [vmem:[%s1865_s21] sm:$0xff] %v759_v22  ;;  %s893_s21 = sadd.s32 (%p450_p9), 1, %s1603_s16  }
 0x2bb   : >>> { %v778_v21 = vsel %vm777_vm14, %v771_v18, %v1480_v19  ;;  %v762_v23 = vpop.permute.xlu1 %761  ;;  %p446_p10 = scmp.ge.s32.totalorder (%p450_p9), %s893_s21, 15  ;;  %s1983_s16 = smov (%p450_p9), %s893_s21 }
 0x2bc   : >>> { %781 = vst [vmem:[%s769_s26] sm:$0xff] %v778_v21  ;;  %v795_v24 = vld [vmem:[%s793_s24] ss:$0 sm:$0xff]  ;;  %v1485_v26 = vld [vmem:[%s793_s24 + $0x7] ss:$0 sm:$0xff]  ;;  %v766_v27 = vsel %vm733_vm7, %v743_v1, %v762_v23 }
 0x2bd   : >>> { %v1484_v25 = vld [vmem:[%s793_s24 - $0x1] sm:$0xfe]  ;;  %768 = vst [vmem:[%s1868_s15] sm:$0xff] %v766_v27  ;;  %s411_s15 = smov (%p450_p9), [#allocation13] }
 0x2be   : >>> { %v802_v28 = vsel %vm777_vm14, %v795_v24, %v1484_v25 }
 0x2bf   : >>> { %805 = vst [vmem:[%s793_s24] sm:$0xff] %v802_v28 }
 0x2c1   : >>> { %v782_v29 = vld [vmem:[%s770_s28] ss:$0 sm:$0xff]  ;;  %v1483_v30 = vld [vmem:[%s770_s28 + $0x1] sm:$0x7f] }
 0x2c2   : >>> { %1482 = vst [vmem:[%s769_s26 + $0x1] sm:$0x1] %v782_v29  ;;  %v790_v31 = vsel %vm789_vm15, %v1481_v20, %v1483_v30  ;;  %452 = sbr.rel (!%p450_p9) target bundleno = 274 (0x112), region = 502 }
 0x2c3   : >>> { %792 = vst [vmem:[%s770_s28] sm:$0xff] %v790_v31 }
 0x2c4   : >>> { %v806_v32 = vld [vmem:[%s794_s27] ss:$0 sm:$0xff]  ;;  %v1487_v33 = vld [vmem:[%s794_s27 + $0x1] sm:$0x7f] }
 0x2c5   : >>> { %1486 = vst [vmem:[%s793_s24 + $0x1] sm:$0x1] %v806_v32  ;;  %v814_v34 = vsel %vm789_vm15, %v1485_v26, %v1487_v33 }
 0x2c6   : >>> { %816 = vst [vmem:[%s794_s27] sm:$0xff] %v814_v34 }
 0x2c9   : >> { %v364_v35 = vld [vmem:[%s358_s22] sm:$0xff] }
 0x2ca   : >> { %v365_v37 = vsel %vm1349_vm2, %v364_v35, 0.0  ;;  %v400_v39 = vld [vmem:[%s394_s11] sm:$0xff] }
 0x2cb   : >> { %v366_v41 = vmul.f32 %v365_v37, %v365_v37  ;;  %v401_v43 = vsel %vm1349_vm2, %v400_v39, 0.0 }
 0x2cc   : >> { %v383_v36 = vld [vmem:[%s377_s29] sm:$0xff]  ;;  %v402_v45 = vmul.f32 %v401_v43, %v401_v43 }
 0x2cd   : >> { %v384_v38 = vsel %vm1349_vm2, %v383_v36, 0.0  ;;  %v417_v40 = vld [vmem:[%s411_s15] sm:$0xff]  ;;  %v370_v48 = vsel %vm369_vm8, 0.0, %v366_v41 }
 0x2ce   : >> { %v385_v42 = vmul.f32 %v384_v38, %v384_v38  ;;  %v418_v44 = vsel %vm1349_vm2, %v417_v40, 0.0 }
 0x2cf   : >> { %v419_v47 = vmul.f32 %v418_v44, %v418_v44 }
 0x2d0   : >> { %v387_v46 = vadd.f32 %v385_v42, %v366_v41  ;;  %v386_v49 = vadd.f32 %v385_v42, %v370_v48 }
 0x2d1   : >> { %v423_v52 = vsel %vm422_vm9, 0.0, %v419_v47 }
 0x2d2   : >> { %v404_v50 = vadd.f32 %v402_v45, %v387_v46  ;;  %v403_v51 = vadd.f32 %v402_v45, %v386_v49 }
 0x2d4   : >> { %v425_v53 = vadd.f32 %v419_v47, %v404_v50  ;;  %v424_v54 = vadd.f32 %v423_v52, %v403_v51 }
 0x2d6   : >> { %426 = vadd.xlane.f32.xlu0 %v425_v53 }
 0x2da   : >> { %434 = vadd.xlane.f32.xlu0 %v424_v54 }
 0x363   : >> { %v427_v55 = vpop.xlane.xlu0 %426 }
 0x364   : >> { %v428_v56 = vrot.slane %v427_v55, 4 }
 0x366   : >> { %v429_v57 = vadd.f32 %v428_v56, %v427_v55 }
 0x367   : >> { %v435_v58 = vpop.xlane.xlu0 %434 }
 0x368   : >> { %v430_v59 = vrot.slane %v429_v57, 2  ;;  %v436_v60 = vrot.slane %v435_v58, 4 }
 0x36a   : >> { %v437_v61 = vadd.f32 %v436_v60, %v435_v58  ;;  %v431_v62 = vadd.f32 %v430_v59, %v429_v57 }
 0x36c   : >> { %v438_v63 = vrot.slane %v437_v61, 2  ;;  %v432_v1 = vrot.slane %v431_v62, 1 }
 0x36e   : >> { %v439_v0 = vadd.f32 %v438_v63, %v437_v61  ;;  %v433_v4 = vadd.f32 %v432_v1, %v431_v62 }
 0x370   : >> { %v440_v2 = vrot.slane %v439_v0, 1 }
 0x372   : >> { %v441_v3 = vadd.f32 %v440_v2, %v439_v0 }
 0x374   : >> { %1514 = vpush %v441_v3 }
 0x375   : >> { %1516 = vpush %v433_v4 }
 0x3a5   : >> { %s1515_s23 = spop %1514 }
 0x3a6   : >> { %s1517_s26 = spop %1516 }
 0x3a7   : >> { %s444_s24 = smul.f32 1e-10, %s1517_s26 }
 0x3a9   : >> { %p445_p11 = scmp.le.f32.partialorder %s1515_s23, %s444_s24 }
 0x3ab   : >> { %p447_p12 = por %p446_p10, %p445_p11 }
 0x3ad   : > { %895 = sbr.rel (!%p447_p12) target bundleno = 273 (0x111), region = 513 }
 0x3b4 PF: > { %s900_s28 = smov [#allocation10]  ;;  %v904_v5 = vmov %v1717_v5  ;;  %v907_v6 = vmov %v1719_v6  ;;  %s920_s16 = smov [#allocation13] }
 0x3b5   : > { %v924_v5 = vmov %v1717_v5  ;;  %v927_v6 = vmov %v1719_v6  ;;  %v908_v7 = vld [vmem:[%s900_s28] sm:$0xff]  ;;  %vm911_vm10 = vcmp.eq.s32.totalorder %v907_v6, %v904_v5  ;;  %s896_s27 = sand.u32 7, %s1678_s12   ;;  %s1984_s22 = scalar_lea.vmem [#allocation5], %s1715_s18 }
 0x3b6   : > { %vm931_vm11 = vcmp.eq.s32.totalorder %v927_v6, %v924_v5  ;;  %v912_v8 = vsel %vm911_vm10, %v908_v7, 0.0  ;;  %v928_v10 = vld [vmem:[%s920_s16] sm:$0xff]  ;;  %s897_s21 = scalar_lea.vmem %s283_s25, %s896_s27 [#allocation4]  ;;  %s899_s29 = scalar_lea.vmem %s1984_s22, %s896_s27 [#allocation5] }
 0x3b7   : > { %v913_v9 = vrot.slane %v912_v8, 4  ;;  %v932_v11 = vsel %vm931_vm11, %v928_v10, 0.0  ;;  %s901_s21 = smov %s897_s21  ;;  %s921_s29 = smov %s899_s29 }
 0x3b8   : > { %v933_v13 = vrot.slane %v932_v11, 4  ;;  %s967_s11 = sshrl.u32 (%p1692_p3), %s1678_s12, 3 }
 0x3b9   : > { %v914_v12 = vadd.f32 %v913_v9, %v912_v8  ;;  %s1502_s15 = sshll.u32 (%p1692_p3), %s967_s11, 3 }
 0x3ba   : > { %v934_v15 = vadd.f32 %v933_v13, %v932_v11  ;;  %s969_s24 = scalar_lea.vmem (%p1692_p3), %s1975_s4, %s1502_s15 }
 0x3bb   : > { %v915_v14 = vrot.slane %v914_v12, 2 }
 0x3bc   : > { %v935_v17 = vrot.slane %v934_v15, 2 }
 0x3bd   : > { %v916_v16 = vadd.f32 %v915_v14, %v914_v12 }
 0x3be   : > { %v936_v19 = vadd.f32 %v935_v17, %v934_v15  ;;  %966 = sbr.rel (!%p1692_p3) target bundleno = 972 (0x3cc), region = 174 }
 0x3bf   : > { %v917_v18 = vrot.slane %v916_v16, 1 }
 0x3c0   : > { %v937_v6 = vrot.slane %v936_v19, 1 }
 0x3c1   : > { %v918_v5 = vadd.f32 %v917_v18, %v916_v16 }
 0x3c2   : > { %v938_v20 = vadd.f32 %v937_v6, %v936_v19 }
 0x3c3   : > { %919 = vst [vmem:[%s901_s21] sm:$0x1] %v918_v5 }
 0x3c4   : > { %939 = vst [vmem:[%s921_s29] sm:$0x1] %v938_v20 }
 0x3ca   : > { %v997_v21 = vld [vmem:[%s283_s25] sm:$0xff] }
 0x3cb   : > { %998 = vst [vmem:[%s969_s24] sm:$0xff] %v997_v21 }
 0x3cc PF: > { %1004 = sbr.rel (!%p1692_p3) target bundleno = 980 (0x3d4), region = 212  ;;  %s1005_s28 = sshrl.u32 (%p1692_p3), %s1678_s12, 3 }
 0x3cd   : > { %s1985_s16 = scalar_lea.vmem (%p1692_p3), [#allocation5], %s1715_s18  ;;  %s1503_s27 = sshll.u32 (%p1692_p3), %s1005_s28, 3 }
 0x3ce   : > { %s1007_s25 = scalar_lea.vmem (%p1692_p3), %s1976_s5, %s1503_s27 }
 0x3d2   : > { %v1035_v22 = vld [vmem:[%s1985_s16] sm:$0xff] (%p1692_p3) }
 0x3d3   : > { %1036 = vst [vmem:[%s1007_s25] sm:$0xff] %v1035_v22 }
 0x3d4 PF: > { %s1504_s29 = sshll.u32 %s1678_s12, 3  ;;  %v1069_v23 = vld [vmem:[%s1721_s14] sm:$0xff]  ;;  %v1103_v24 = vld [vmem:[%s1724_s30] sm:$0xff] }
 0x3d5   : > { %v1137_v25 = vld [vmem:[%s1727_s17] sm:$0xff]  ;;  %s1041_s18 = scalar_lea.vmem %s1977_s6, %s1504_s29  ;;  %s1075_s26 = scalar_lea.vmem %s1978_s7, %s1504_s29  ;;  %v1171_v26 = vld [vmem:[%s1730_s20] sm:$0xff] }
 0x3d6   : > { %1070 = vst [vmem:[%s1041_s18] sm:$0xff] %v1069_v23  ;;  %1104 = vst [vmem:[%s1075_s26] sm:$0xff] %v1103_v24  ;;  %s1109_s16 = scalar_lea.vmem %s1979_s8, %s1504_s29  ;;  %s1143_s14 = scalar_lea.vmem %s1980_s9, %s1504_s29 }
 0x3d7   : > { %1138 = vst [vmem:[%s1109_s16] sm:$0xff] %v1137_v25  ;;  %1172 = vst [vmem:[%s1143_s14] sm:$0xff] %v1171_v26 }
 0x3d8 PF: > { %s1986_s17 = sld [smem:[#allocation23_spill]]  ;;  %p13_p13 = scmp.ge.s32.totalorder %s1681_s13, 10  }
 0x3d9   : > { %s1987_s30 = smov %s1595_s10  ;;  %s1989_s11 = smov %s1681_s13 }
 0x3da   :  { %15 = sbr.rel (!%p13_p13) target bundleno = 2 (0x2), region = 524 }
 0x3de   : > { %s1988_s10 = smov %s1986_s17 }

// kernel: branch_0_fun.2
= control target key start
LH: loop header
LB: loop body
LE: loop exit
PB: predicated region body
PF: predicated region fallthrough
CT: control target
= control target key end

     0   :  { %s437_s0 = inlined_call_operand.vmem [shape: f32[256,256], index: 0, kind: input, shape index: {}]   ;;  %s438_s1 = inlined_call_operand.vmem [shape: f32[8,256], index: 1, kind: input, shape index: {}]   ;;  %s439_s2 = inlined_call_operand.vmem [shape: f32[8,256], index: 2, kind: output, shape index: {}]  }
   0x1   :  { %v14_v0 = vld [vmem:[%s437_s0 + $0x8] sm:$0xff]  ;;  %v16_v1 = vld [vmem:[%s437_s0 + $0x18] sm:$0xff]  ;;  %v13_v2 = vld [vmem:[%s437_s0] sm:$0xff] }
   0x2   :  { %v154_v3 = vpack.c.bf16 %v16_v1, %v14_v0  ;;  %v15_v4 = vld [vmem:[%s437_s0 + $0x10] sm:$0xff]  ;;  %v18_v5 = vld [vmem:[%s437_s0 + $0x28] sm:$0xff]  ;;  %v20_v6 = vld [vmem:[%s437_s0 + $0x38] sm:$0xff] }
   0x3   :  { %v156_v7 = vpack.c.bf16 %v15_v4, %v13_v2  ;;  %v158_v8 = vpack.c.bf16 %v20_v6, %v18_v5  ;;  %v17_v9 = vld [vmem:[%s437_s0 + $0x20] sm:$0xff]  ;;  %v19_v10 = vld [vmem:[%s437_s0 + $0x30] sm:$0xff]  ;;  %v22_v11 = vld [vmem:[%s437_s0 + $0x48] sm:$0xff] }
   0x4   :  { %155 = vmatprep.subr.bf16.mxu0 %v154_v3  ;;  %v24_v12 = vld [vmem:[%s437_s0 + $0x58] sm:$0xff]  ;;  %v160_v13 = vpack.c.bf16 %v19_v10, %v17_v9  ;;  %v21_v15 = vld [vmem:[%s437_s0 + $0x40] sm:$0xff]  ;;  %v23_v16 = vld [vmem:[%s437_s0 + $0x50] sm:$0xff] }
   0x5   :  { %157 = vmatpush1.bf16.msra.mxu0 %v156_v7  ;;  %v162_v14 = vpack.c.bf16 %v24_v12, %v22_v11  ;;  %v26_v17 = vld [vmem:[%s437_s0 + $0x68] sm:$0xff]  ;;  %v28_v18 = vld [vmem:[%s437_s0 + $0x78] sm:$0xff]  ;;  %v164_v19 = vpack.c.bf16 %v23_v16, %v21_v15  ;;  %v25_v21 = vld [vmem:[%s437_s0 + $0x60] sm:$0xff] }
   0x6   :  { %159 = vmatprep.subr.bf16.mxu0 %v158_v8  ;;  %v166_v20 = vpack.c.bf16 %v28_v18, %v26_v17  ;;  %v27_v22 = vld [vmem:[%s437_s0 + $0x70] sm:$0xff]  ;;  %v30_v23 = vld [vmem:[%s437_s0 + $0x88] sm:$0xff]  ;;  %v32_v24 = vld [vmem:[%s437_s0 + $0x98] sm:$0xff] }
   0x7   :  { %v168_v25 = vpack.c.bf16 %v27_v22, %v25_v21  ;;  %v170_v26 = vpack.c.bf16 %v32_v24, %v30_v23  ;;  %v29_v27 = vld [vmem:[%s437_s0 + $0x80] sm:$0xff]  ;;  %v31_v28 = vld [vmem:[%s437_s0 + $0x90] sm:$0xff]  ;;  %v34_v29 = vld [vmem:[%s437_s0 + $0xa8] sm:$0xff] }
   0x8   :  { %v36_v30 = vld [vmem:[%s437_s0 + $0xb8] sm:$0xff]  ;;  %v172_v31 = vpack.c.bf16 %v31_v28, %v29_v27  ;;  %v33_v33 = vld [vmem:[%s437_s0 + $0xa0] sm:$0xff]  ;;  %v35_v34 = vld [vmem:[%s437_s0 + $0xb0] sm:$0xff] }
   0x9   :  { %161 = vmatpush1.bf16.msra.mxu0 %v160_v13  ;;  %v174_v32 = vpack.c.bf16 %v36_v30, %v34_v29  ;;  %v38_v35 = vld [vmem:[%s437_s0 + $0xc8] sm:$0xff]  ;;  %v40_v36 = vld [vmem:[%s437_s0 + $0xd8] sm:$0xff]  ;;  %v176_v37 = vpack.c.bf16 %v35_v34, %v33_v33  ;;  %v37_v39 = vld [vmem:[%s437_s0 + $0xc0] sm:$0xff] }
   0xa   :  { %163 = vmatprep.subr.bf16.mxu0 %v162_v14  ;;  %v178_v38 = vpack.c.bf16 %v40_v36, %v38_v35  ;;  %v39_v40 = vld [vmem:[%s437_s0 + $0xd0] sm:$0xff]  ;;  %v12_v41 = vld [vmem:[%s438_s1 + $0x8] sm:$0xff]  ;;  %v44_v43 = vld [vmem:[%s437_s0 + $0xf8] sm:$0xff] }
   0xb   :  { %v42_v42 = vld [vmem:[%s437_s0 + $0xe8] sm:$0xff]  ;;  %141 = vmatprep.mubr.f32.mxu0 %v12_v41  ;;  %v180_v44 = vpack.c.bf16 %v39_v40, %v37_v39  ;;  %v41_v46 = vld [vmem:[%s437_s0 + $0xe0] sm:$0xff]  ;;  %v43_v47 = vld [vmem:[%s437_s0 + $0xf0] sm:$0xff] }
   0xc   :  { %v182_v45 = vpack.c.bf16 %v44_v43, %v42_v42  ;;  %v46_v48 = vld [vmem:[%s437_s0 + $0x108] sm:$0xff]  ;;  %v48_v49 = vld [vmem:[%s437_s0 + $0x118] sm:$0xff]  ;;  %v184_v50 = vpack.c.bf16 %v43_v47, %v41_v46  ;;  %v45_v52 = vld [vmem:[%s437_s0 + $0x100] sm:$0xff] }
   0xd   :  { %165 = vmatpush1.bf16.msra.mxu0 %v164_v19  ;;  %v186_v51 = vpack.c.bf16 %v48_v49, %v46_v48  ;;  %v47_v53 = vld [vmem:[%s437_s0 + $0x110] sm:$0xff]  ;;  %v50_v54 = vld [vmem:[%s437_s0 + $0x128] sm:$0xff]  ;;  %v52_v55 = vld [vmem:[%s437_s0 + $0x138] sm:$0xff] }
   0xe   :  { %167 = vmatprep.subr.bf16.mxu0 %v166_v20  ;;  %v188_v56 = vpack.c.bf16 %v47_v53, %v45_v52  ;;  %v190_v57 = vpack.c.bf16 %v52_v55, %v50_v54  ;;  %v49_v58 = vld [vmem:[%s437_s0 + $0x120] sm:$0xff]  ;;  %v51_v59 = vld [vmem:[%s437_s0 + $0x130] sm:$0xff]  ;;  %v54_v60 = vld [vmem:[%s437_s0 + $0x148] sm:$0xff] }
   0xf   :  { %v56_v61 = vld [vmem:[%s437_s0 + $0x158] sm:$0xff]  ;;  %v192_v62 = vpack.c.bf16 %v51_v59, %v49_v58  ;;  %v53_v0 = vld [vmem:[%s437_s0 + $0x140] sm:$0xff]  ;;  %v55_v1 = vld [vmem:[%s437_s0 + $0x150] sm:$0xff] }
  0x10   :  { %v194_v63 = vpack.c.bf16 %v56_v61, %v54_v60  ;;  %v58_v2 = vld [vmem:[%s437_s0 + $0x168] sm:$0xff]  ;;  %v60_v3 = vld [vmem:[%s437_s0 + $0x178] sm:$0xff]  ;;  %v196_v4 = vpack.c.bf16 %v55_v1, %v53_v0  ;;  %v57_v6 = vld [vmem:[%s437_s0 + $0x160] sm:$0xff] }
  0x11   :  { %169 = vmatpush1.bf16.msra.mxu0 %v168_v25  ;;  %v198_v5 = vpack.c.bf16 %v60_v3, %v58_v2  ;;  %v59_v7 = vld [vmem:[%s437_s0 + $0x170] sm:$0xff]  ;;  %v62_v8 = vld [vmem:[%s437_s0 + $0x188] sm:$0xff]  ;;  %v64_v9 = vld [vmem:[%s437_s0 + $0x198] sm:$0xff] }
  0x12   :  { %171 = vmatprep.subr.bf16.mxu0 %v170_v26  ;;  %v200_v10 = vpack.c.bf16 %v59_v7, %v57_v6  ;;  %v202_v11 = vpack.c.bf16 %v64_v9, %v62_v8  ;;  %v61_v12 = vld [vmem:[%s437_s0 + $0x180] sm:$0xff]  ;;  %v63_v13 = vld [vmem:[%s437_s0 + $0x190] sm:$0xff]  ;;  %v66_v14 = vld [vmem:[%s437_s0 + $0x1a8] sm:$0xff] }
  0x13   :  { %v68_v15 = vld [vmem:[%s437_s0 + $0x1b8] sm:$0xff]  ;;  %v204_v16 = vpack.c.bf16 %v63_v13, %v61_v12  ;;  %v65_v18 = vld [vmem:[%s437_s0 + $0x1a0] sm:$0xff]  ;;  %v67_v19 = vld [vmem:[%s437_s0 + $0x1b0] sm:$0xff] }
  0x14   :  { %v206_v17 = vpack.c.bf16 %v68_v15, %v66_v14  ;;  %v70_v20 = vld [vmem:[%s437_s0 + $0x1c8] sm:$0xff]  ;;  %v72_v21 = vld [vmem:[%s437_s0 + $0x1d8] sm:$0xff]  ;;  %v208_v22 = vpack.c.bf16 %v67_v19, %v65_v18  ;;  %v69_v24 = vld [vmem:[%s437_s0 + $0x1c0] sm:$0xff] }
  0x15   :  { %173 = vmatpush1.bf16.msra.mxu0 %v172_v31  ;;  %v210_v23 = vpack.c.bf16 %v72_v21, %v70_v20  ;;  %v71_v25 = vld [vmem:[%s437_s0 + $0x1d0] sm:$0xff]  ;;  %v74_v26 = vld [vmem:[%s437_s0 + $0x1e8] sm:$0xff]  ;;  %v76_v27 = vld [vmem:[%s437_s0 + $0x1f8] sm:$0xff] }
  0x16   :  { %175 = vmatprep.subr.bf16.mxu0 %v174_v32  ;;  %v212_v28 = vpack.c.bf16 %v71_v25, %v69_v24  ;;  %v214_v29 = vpack.c.bf16 %v76_v27, %v74_v26  ;;  %v73_v30 = vld [vmem:[%s437_s0 + $0x1e0] sm:$0xff]  ;;  %v75_v31 = vld [vmem:[%s437_s0 + $0x1f0] sm:$0xff] }
  0x17   :  { %v216_v32 = vpack.c.bf16 %v75_v31, %v73_v30  ;;  %v11_v33 = vld [vmem:[%s438_s1] sm:$0xff] }
  0x19   :  { %177 = vmatpush1.bf16.msra.mxu0 %v176_v37 }
  0x1a   :  { %179 = vmatprep.subr.bf16.mxu0 %v178_v38 }
  0x1d   :  { %181 = vmatpush1.bf16.msra.mxu0 %v180_v44 }
  0x1e   :  { %183 = vmatprep.subr.bf16.mxu0 %v182_v45 }
  0x21   :  { %185 = vmatpush1.bf16.msra.mxu0 %v184_v50 }
  0x22   :  { %187 = vmatprep.subr.bf16.mxu0 %v186_v51 }
  0x25   :  { %189 = vmatpush1.bf16.msra.mxu0 %v188_v56 }
  0x26   :  { %191 = vmatprep.subr.bf16.mxu0 %v190_v57 }
  0x29   :  { %193 = vmatpush1.bf16.msra.mxu0 %v192_v62 }
  0x2a   :  { %195 = vmatprep.subr.bf16.mxu0 %v194_v63 }
  0x2d   :  { %197 = vmatpush1.bf16.msra.mxu0 %v196_v4 }
  0x2e   :  { %199 = vmatprep.subr.bf16.mxu0 %v198_v5 }
  0x31   :  { %201 = vmatpush1.bf16.msra.mxu0 %v200_v10 }
  0x32   :  { %203 = vmatprep.subr.bf16.mxu0 %v202_v11 }
  0x35   :  { %205 = vmatpush1.bf16.msra.mxu0 %v204_v16 }
  0x36   :  { %207 = vmatprep.subr.bf16.mxu0 %v206_v17 }
  0x39   :  { %209 = vmatpush1.bf16.msra.mxu0 %v208_v22 }
  0x3a   :  { %211 = vmatprep.subr.bf16.mxu0 %v210_v23 }
  0x3d   :  { %213 = vmatpush1.bf16.msra.mxu0 %v212_v28 }
  0x3e   :  { %215 = vmatprep.subr.bf16.mxu0 %v214_v29 }
  0x41   :  { %217 = vmatpush1.bf16.msra.mxu0 %v216_v32 }
  0x44   :  { %142 = vmatmul.mubr.f32.vlgmr.msra.gmra.mrb[0].mxu0 %v11_v33 }
 0x117   :  { %v143_v34 = vpop.f32.mrb[0].mxu0 }
 0x118   :  { %148 = vst [vmem:[%s439_s2] sm:$0xff] %v143_v34  ;;  %v145_v35 = vpop.f32.mrb[1].mxu0 }
 0x119   :  { %149 = vst [vmem:[%s439_s2 + $0x8] sm:$0xff] %v145_v35 }

// kernel: _forward_train.1
= control target key start
LH: loop header
LB: loop body
LE: loop exit
PB: predicated region body
PF: predicated region fallthrough
CT: control target
= control target key end

     0   :  { %s480_s0 = inlined_call_operand.vmem [shape: f32[256,256], index: 0, kind: input, shape index: {}]   ;;  %s481_s1 = inlined_call_operand.vmem [shape: f32[8,256], index: 1, kind: input, shape index: {}]   ;;  %s482_s2 = inlined_call_operand.hbm [shape: f32[8,256], index: 2, kind: output, shape index: {}]  }
   0x1   :  { %v15_v0 = vld [vmem:[%s480_s0 + $0x8] sm:$0xff]  ;;  %v17_v1 = vld [vmem:[%s480_s0 + $0x18] sm:$0xff]  ;;  %v14_v2 = vld [vmem:[%s480_s0] sm:$0xff] }
   0x2   :  { %v165_v3 = vpack.c.bf16 %v17_v1, %v15_v0  ;;  %v16_v4 = vld [vmem:[%s480_s0 + $0x10] sm:$0xff]  ;;  %v19_v5 = vld [vmem:[%s480_s0 + $0x28] sm:$0xff]  ;;  %v21_v6 = vld [vmem:[%s480_s0 + $0x38] sm:$0xff] }
   0x3   :  { %v167_v7 = vpack.c.bf16 %v16_v4, %v14_v2  ;;  %v169_v8 = vpack.c.bf16 %v21_v6, %v19_v5  ;;  %v18_v9 = vld [vmem:[%s480_s0 + $0x20] sm:$0xff]  ;;  %v20_v10 = vld [vmem:[%s480_s0 + $0x30] sm:$0xff]  ;;  %v23_v11 = vld [vmem:[%s480_s0 + $0x48] sm:$0xff] }
   0x4   :  { %166 = vmatprep.subr.bf16.mxu0 %v165_v3  ;;  %v25_v12 = vld [vmem:[%s480_s0 + $0x58] sm:$0xff]  ;;  %v171_v13 = vpack.c.bf16 %v20_v10, %v18_v9  ;;  %v22_v15 = vld [vmem:[%s480_s0 + $0x40] sm:$0xff]  ;;  %v24_v16 = vld [vmem:[%s480_s0 + $0x50] sm:$0xff] }
   0x5   :  { %168 = vmatpush1.bf16.msra.mxu0 %v167_v7  ;;  %v173_v14 = vpack.c.bf16 %v25_v12, %v23_v11  ;;  %v27_v17 = vld [vmem:[%s480_s0 + $0x68] sm:$0xff]  ;;  %v29_v18 = vld [vmem:[%s480_s0 + $0x78] sm:$0xff]  ;;  %v175_v19 = vpack.c.bf16 %v24_v16, %v22_v15  ;;  %v26_v21 = vld [vmem:[%s480_s0 + $0x60] sm:$0xff] }
   0x6   :  { %170 = vmatprep.subr.bf16.mxu0 %v169_v8  ;;  %v177_v20 = vpack.c.bf16 %v29_v18, %v27_v17  ;;  %v28_v22 = vld [vmem:[%s480_s0 + $0x70] sm:$0xff]  ;;  %v31_v23 = vld [vmem:[%s480_s0 + $0x88] sm:$0xff]  ;;  %v33_v24 = vld [vmem:[%s480_s0 + $0x98] sm:$0xff] }
   0x7   :  { %v179_v25 = vpack.c.bf16 %v28_v22, %v26_v21  ;;  %v181_v26 = vpack.c.bf16 %v33_v24, %v31_v23  ;;  %v30_v27 = vld [vmem:[%s480_s0 + $0x80] sm:$0xff]  ;;  %v32_v28 = vld [vmem:[%s480_s0 + $0x90] sm:$0xff]  ;;  %v35_v29 = vld [vmem:[%s480_s0 + $0xa8] sm:$0xff] }
   0x8   :  { %v37_v30 = vld [vmem:[%s480_s0 + $0xb8] sm:$0xff]  ;;  %v183_v31 = vpack.c.bf16 %v32_v28, %v30_v27  ;;  %v34_v33 = vld [vmem:[%s480_s0 + $0xa0] sm:$0xff]  ;;  %v36_v34 = vld [vmem:[%s480_s0 + $0xb0] sm:$0xff] }
   0x9   :  { %172 = vmatpush1.bf16.msra.mxu0 %v171_v13  ;;  %v185_v32 = vpack.c.bf16 %v37_v30, %v35_v29  ;;  %v39_v35 = vld [vmem:[%s480_s0 + $0xc8] sm:$0xff]  ;;  %v41_v36 = vld [vmem:[%s480_s0 + $0xd8] sm:$0xff]  ;;  %v187_v37 = vpack.c.bf16 %v36_v34, %v34_v33  ;;  %v38_v39 = vld [vmem:[%s480_s0 + $0xc0] sm:$0xff] }
   0xa   :  { %174 = vmatprep.subr.bf16.mxu0 %v173_v14  ;;  %v189_v38 = vpack.c.bf16 %v41_v36, %v39_v35  ;;  %v40_v40 = vld [vmem:[%s480_s0 + $0xd0] sm:$0xff]  ;;  %v13_v41 = vld [vmem:[%s481_s1 + $0x8] sm:$0xff]  ;;  %v45_v43 = vld [vmem:[%s480_s0 + $0xf8] sm:$0xff] }
   0xb   :  { %v43_v42 = vld [vmem:[%s480_s0 + $0xe8] sm:$0xff]  ;;  %142 = vmatprep.mubr.f32.mxu0 %v13_v41 }
   0xd   :  { %176 = vmatpush1.bf16.msra.mxu0 %v175_v19 }
   0xe   :  { %178 = vmatprep.subr.bf16.mxu0 %v177_v20 }
  0x11   :  { %180 = vmatpush1.bf16.msra.mxu0 %v179_v25 }
  0x12   :  { %182 = vmatprep.subr.bf16.mxu0 %v181_v26 }
  0x15   :  { %184 = vmatpush1.bf16.msra.mxu0 %v183_v31 }
  0x16   :  { %186 = vmatprep.subr.bf16.mxu0 %v185_v32 }
  0x17   :  { %7 = vsyncpa [#allocation3], 0  ;;  %v191_v44 = vpack.c.bf16 %v40_v40, %v38_v39  ;;  %v193_v45 = vpack.c.bf16 %v45_v43, %v43_v42  ;;  %v42_v46 = vld [vmem:[%s480_s0 + $0xe0] sm:$0xff]  ;;  %v44_v47 = vld [vmem:[%s480_s0 + $0xf0] sm:$0xff]  ;;  %s254_s29 = smov [#allocation2]  }
  0x18   :  { %v47_v48 = vld [vmem:[%s480_s0 + $0x108] sm:$0xff]  ;;  %v49_v49 = vld [vmem:[%s480_s0 + $0x118] sm:$0xff]  ;;  %v195_v50 = vpack.c.bf16 %v44_v47, %v42_v46  ;;  %v46_v52 = vld [vmem:[%s480_s0 + $0x100] sm:$0xff]  ;;  %s157_s30 = sshll.u32 %s254_s29, 4  ;;  %s158_s30 = int_to_ptr.vmem [resolvable:$true] %s157_s30 }
  0x19   :  { %188 = vmatpush1.bf16.msra.mxu0 %v187_v37  ;;  %v197_v51 = vpack.c.bf16 %v49_v49, %v47_v48  ;;  %v48_v53 = vld [vmem:[%s480_s0 + $0x110] sm:$0xff]  ;;  %v51_v54 = vld [vmem:[%s480_s0 + $0x128] sm:$0xff]  ;;  %v53_v55 = vld [vmem:[%s480_s0 + $0x138] sm:$0xff]  ;;  %s230_s3 = scalar_lea.vmem %s158_s30, 256  ;;  %p235_p1 = scmp.lt.s32.totalorder %s158_s30, %s158_s30 }
  0x1a   :  { %190 = vmatprep.subr.bf16.mxu0 %v189_v38  ;;  %v199_v56 = vpack.c.bf16 %v48_v53, %v46_v52  ;;  %v201_v57 = vpack.c.bf16 %v53_v55, %v51_v54  ;;  %v50_v58 = vld [vmem:[%s480_s0 + $0x120] sm:$0xff]  ;;  %v52_v59 = vld [vmem:[%s480_s0 + $0x130] sm:$0xff]  ;;  %v55_v60 = vld [vmem:[%s480_s0 + $0x148] sm:$0xff]  ;;  %p231_p0 = scmp.ne.s32.totalorder %s158_s30, %s230_s3  ;;  %p236_p2 = scmp.lt.s32.totalorder %s230_s3, %s230_s3 }
  0x1b   :  { %v57_v61 = vld [vmem:[%s480_s0 + $0x158] sm:$0xff]  ;;  %v203_v62 = vpack.c.bf16 %v52_v59, %v50_v58  ;;  %v54_v0 = vld [vmem:[%s480_s0 + $0x140] sm:$0xff]  ;;  %v56_v1 = vld [vmem:[%s480_s0 + $0x150] sm:$0xff] }
  0x1c   :  { %v205_v63 = vpack.c.bf16 %v57_v61, %v55_v60  ;;  %v59_v2 = vld [vmem:[%s480_s0 + $0x168] sm:$0xff]  ;;  %v61_v3 = vld [vmem:[%s480_s0 + $0x178] sm:$0xff]  ;;  %v207_v4 = vpack.c.bf16 %v56_v1, %v54_v0  ;;  %v58_v6 = vld [vmem:[%s480_s0 + $0x160] sm:$0xff]  ;;  %p237_p3 = por %p236_p2, %p235_p1 }
  0x1d   :  { %192 = vmatpush1.bf16.msra.mxu0 %v191_v44  ;;  %v209_v5 = vpack.c.bf16 %v61_v3, %v59_v2  ;;  %v60_v7 = vld [vmem:[%s480_s0 + $0x170] sm:$0xff]  ;;  %v63_v8 = vld [vmem:[%s480_s0 + $0x188] sm:$0xff]  ;;  %v65_v9 = vld [vmem:[%s480_s0 + $0x198] sm:$0xff] }
  0x1e   :  { %194 = vmatprep.subr.bf16.mxu0 %v193_v45  ;;  %v211_v10 = vpack.c.bf16 %v60_v7, %v58_v6  ;;  %v213_v11 = vpack.c.bf16 %v65_v9, %v63_v8  ;;  %v62_v12 = vld [vmem:[%s480_s0 + $0x180] sm:$0xff]  ;;  %v64_v13 = vld [vmem:[%s480_s0 + $0x190] sm:$0xff]  ;;  %v67_v14 = vld [vmem:[%s480_s0 + $0x1a8] sm:$0xff]  ;;  %p238_p4 = pnand %p237_p3, %p231_p0 }
  0x1f   :  { %v69_v15 = vld [vmem:[%s480_s0 + $0x1b8] sm:$0xff]  ;;  %v215_v16 = vpack.c.bf16 %v64_v13, %v62_v12  ;;  %v66_v18 = vld [vmem:[%s480_s0 + $0x1a0] sm:$0xff]  ;;  %v68_v19 = vld [vmem:[%s480_s0 + $0x1b0] sm:$0xff] }
  0x20   :  { %v217_v17 = vpack.c.bf16 %v69_v15, %v67_v14  ;;  %v71_v20 = vld [vmem:[%s480_s0 + $0x1c8] sm:$0xff]  ;;  %v73_v21 = vld [vmem:[%s480_s0 + $0x1d8] sm:$0xff]  ;;  %v219_v22 = vpack.c.bf16 %v68_v19, %v66_v18  ;;  %v70_v24 = vld [vmem:[%s480_s0 + $0x1c0] sm:$0xff] }
  0x21   :  { %196 = vmatpush1.bf16.msra.mxu0 %v195_v50  ;;  %v221_v23 = vpack.c.bf16 %v73_v21, %v71_v20  ;;  %v72_v25 = vld [vmem:[%s480_s0 + $0x1d0] sm:$0xff]  ;;  %v75_v26 = vld [vmem:[%s480_s0 + $0x1e8] sm:$0xff]  ;;  %v77_v27 = vld [vmem:[%s480_s0 + $0x1f8] sm:$0xff] }
  0x22   :  { %198 = vmatprep.subr.bf16.mxu0 %v197_v51  ;;  %v223_v28 = vpack.c.bf16 %v72_v25, %v70_v24  ;;  %v225_v29 = vpack.c.bf16 %v77_v27, %v75_v26  ;;  %v74_v30 = vld [vmem:[%s480_s0 + $0x1e0] sm:$0xff]  ;;  %v76_v31 = vld [vmem:[%s480_s0 + $0x1f0] sm:$0xff] }
  0x23   :  { %v227_v32 = vpack.c.bf16 %v76_v31, %v74_v30  ;;  %v12_v33 = vld [vmem:[%s481_s1] sm:$0xff] }
  0x25   :  { %200 = vmatpush1.bf16.msra.mxu0 %v199_v56 }
  0x26   :  { %202 = vmatprep.subr.bf16.mxu0 %v201_v57 }
  0x29   :  { %204 = vmatpush1.bf16.msra.mxu0 %v203_v62 }
  0x2a   :  { %206 = vmatprep.subr.bf16.mxu0 %v205_v63 }
  0x2d   :  { %208 = vmatpush1.bf16.msra.mxu0 %v207_v4 }
  0x2e   :  { %210 = vmatprep.subr.bf16.mxu0 %v209_v5 }
  0x31   :  { %212 = vmatpush1.bf16.msra.mxu0 %v211_v10 }
  0x32   :  { %214 = vmatprep.subr.bf16.mxu0 %v213_v11 }
  0x35   :  { %216 = vmatpush1.bf16.msra.mxu0 %v215_v16 }
  0x36   :  { %218 = vmatprep.subr.bf16.mxu0 %v217_v17 }
  0x39   :  { %220 = vmatpush1.bf16.msra.mxu0 %v219_v22 }
  0x3a   :  { %222 = vmatprep.subr.bf16.mxu0 %v221_v23 }
  0x3d   :  { %224 = vmatpush1.bf16.msra.mxu0 %v223_v28 }
  0x3e   :  { %226 = vmatprep.subr.bf16.mxu0 %v225_v29 }
  0x41   :  { %228 = vmatpush1.bf16.msra.mxu0 %v227_v32 }
  0x44   :  { %143 = vmatmul.mubr.f32.vlgmr.msra.gmra.mrb[0].mxu0 %v12_v33 }
 0x117   :  { %v144_v34 = vpop.f32.mrb[0].mxu0 }
 0x118   :  { %149 = vst [vmem:[#allocation2] sm:$0xff] %v144_v34  ;;  %v146_v35 = vpop.f32.mrb[1].mxu0 }
 0x119   :  { %150 = vst [vmem:[#allocation2 + $0x8] sm:$0xff] %v146_v35 }
 0x11a   :  { %241 = shalt.err (!%p238_p4)
}
 0x11b   :  { %s242_s5 = scalar_lea.hbm %s482_s2, 256 }
 0x11c   :  { %p243_p5 = scmp.ne.s32.totalorder %s482_s2, %s242_s5  ;;  %p246_p6 = scmp.lt.u32.totalorder %s242_s5, %s482_s2 }
 0x11e   :  { %p248_p7 = pnand %p246_p6, %p243_p5 }
 0x120   :  { %251 = shalt.err (!%p248_p7)
}
 0x121   :  { %160 = dma.vmem_to_hbm [thread:$0]  %s158_s30, 256, %s482_s2, [#allocation3]  }
 0x122   :  { %252 = dma.done.wait [#allocation3], 256  }
 0x123   :  { %253 = vsyncadd [#allocation3], 4294967040 }
 0x124   :  { %164 = vsyncpa [#allocation3], 1 }

</bundles_post_ra>
